<compile_context>
chip_gen: v7x
topology: tpu7x:2x2x1
jax: 0.10.0
libtpu: 0.0.40
codegen_flags: <defaults>
</compile_context>

<pallas_src>
import functools

import jax
import jax.numpy as jnp
from jax.experimental import pallas as pl
from jax.experimental.pallas import tpu as pltpu


def _edgeconv_kernel(xi_ref, xj_ref, wi_ref, wj_ref, b_ref, o_ref, *, nchw_out):
    # xi_ref, xj_ref : (1, K, TN, C)   gathered center / neighbor features
    # wi_ref         : (C, Cout)       folded weight  W1 - W2   (applied to x_i)
    # wj_ref         : (C, Cout)       folded weight  W2        (applied to x_j)
    # b_ref          : (1, Cout)       conv bias (f32)
    # o_ref          : (1, Cout, TN) if nchw_out else (1, TN, Cout)
    _, k, tn, c = xi_ref.shape
    cout = wi_ref.shape[-1]

    # One big MXU matmul per operand: M = K*TN rows. Merging the leading dims of a
    # (K, TN, C) block (TN is a multiple of 8 or the full axis) is tile-aligned.
    xi = xi_ref[0].reshape(k * tn, c)
    xj = xj_ref[0].reshape(k * tn, c)
    y = jnp.dot(xi, wi_ref[...], preferred_element_type=jnp.float32)
    y = y + jnp.dot(xj, wj_ref[...], preferred_element_type=jnp.float32)  # (K*TN, Cout) f32

    # Max over the K neighbors: pure VPU max across K slabs (leading-axis reduce),
    # then bias + ReLU hoisted out of the K reduction (monotone => exact).
    m = jnp.max(y.reshape(k, tn, cout), axis=0)            # (TN, Cout)
    m = jnp.maximum(m + b_ref[...], 0.0)

    if nchw_out:
        o_ref[0] = m.T.astype(o_ref.dtype)                 # (Cout, TN): lane-dense store
    else:
        o_ref[0] = m.astype(o_ref.dtype)                   # (TN, Cout)


def _pick_tile_n(n, k, c, cout, feat_itemsize, budget_bytes=24 << 20):
    """Largest N-tile that divides N and keeps the double-buffered working set
    (two gathered-feature blocks + output block) under `budget_bytes`, so the
    default 32 MiB scoped-VMEM limit holds on every generation (incl. v7x)."""
    def fits(t):
        return 2 * (2 * k * t * c * feat_itemsize + t * cout * 4) <= budget_bytes
    for t in (1024, 512, 256, 128, 64, 32, 16, 8):
        if t <= n and n % t == 0 and fits(t):
            return t
    return n  # ragged / tiny N: whole axis (block == full dim is always legal)


def edge_graph_conv2d(x, edge_index, weight, bias, y=None,
                      compute_dtype=jnp.bfloat16):
    """Forward of GraphConv2d(conv='edge', act='relu', norm=None, bias=True).

    x          : (B, C, N, 1)  float NCHW node features
    edge_index : (2, B, N, K)  int32  [0] = neighbor (x_j) idx, [1] = center (x_i) idx
    weight     : (Cout, 2C)           Conv2d(2C, Cout, 1).weight[:, :, 0, 0]
    bias       : (Cout,)
    y          : optional (B, C, N, 1) second feature map (x_j gathered from it)
    returns    : (B, Cout, N, 1) in x.dtype
    """
    B, C, N, _ = x.shape
    _, _, _, K = edge_index.shape
    Cout = weight.shape[0]

    # ---- weight fold (in f32, BEFORE any bf16 cast):
    #      cat([x_i, x_j - x_i]) @ W.T == x_i @ (W1 - W2) + x_j @ W2
    w_t = weight.astype(jnp.float32).T                     # (2C, Cout)
    w_i = (w_t[:C] - w_t[C:]).astype(compute_dtype)        # (C, Cout)
    w_j = w_t[C:].astype(compute_dtype)                    # (C, Cout)
    b_row = bias.astype(jnp.float32).reshape(1, Cout)      # (1, Cout)

    # ---- gather per-edge node features directly into the kernel's (B, K, N, C)
    #      layout (no separate transpose pass over the K-inflated tensor).
    # TODO(synk): fuse this batched_index_select into the kernel (VMEM-resident (N, C)
    # node table + in-kernel row gather) once Mosaic's dynamic-gather lowering is robust
    # for arbitrary N; an OOB index in-kernel would silently read stale VMEM.
    x_nc = jnp.swapaxes(x[:, :, :, 0], 1, 2)               # (B, N, C) — tiny, no K factor
    src = x_nc if y is None else jnp.swapaxes(y[:, :, :, 0], 1, 2)
    idx_i = jnp.swapaxes(edge_index[1], 1, 2)              # (B, K, N) int32 (tiny transpose)
    idx_j = jnp.swapaxes(edge_index[0], 1, 2)
    gather = jax.vmap(lambda tbl, idx: tbl[idx])           # (N,C),(K,N) -> (K,N,C)
    xi_g = gather(x_nc, idx_i).astype(compute_dtype)       # (B, K, N, C)
    xj_g = gather(src, idx_j).astype(compute_dtype)        # (B, K, N, C)

    tn = _pick_tile_n(N, K, C, Cout, jnp.dtype(compute_dtype).itemsize)
    n_tiles = N // tn
    # Lane-dense (B, Cout, N) output (unmasked full-width stores, no wrapper transpose)
    # whenever the in-kernel (TN, Cout) -> (Cout, TN) transpose is fully tile-aligned.
    nchw_out = (tn % 128 == 0) and (Cout % 128 == 0)

    kernel = functools.partial(_edgeconv_kernel, nchw_out=nchw_out)

    if nchw_out:
        out_shape = jax.ShapeDtypeStruct((B, Cout, N), jnp.float32)
        out_spec = pl.BlockSpec((1, Cout, tn), lambda b, t: (b, 0, t))
    else:
        out_shape = jax.ShapeDtypeStruct((B, N, Cout), jnp.float32)
        out_spec = pl.BlockSpec((1, tn, Cout), lambda b, t: (b, t, 0))

    out = pl.pallas_call(
        kernel,
        out_shape=out_shape,
        grid_spec=pltpu.PrefetchScalarGridSpec(
            num_scalar_prefetch=0,
            grid=(B, n_tiles),
            in_specs=[
                pl.BlockSpec((1, K, tn, C), lambda b, t: (b, 0, t, 0)),
                pl.BlockSpec((1, K, tn, C), lambda b, t: (b, 0, t, 0)),
                pl.BlockSpec((C, Cout), lambda b, t: (0, 0)),
                pl.BlockSpec((C, Cout), lambda b, t: (0, 0)),
                pl.BlockSpec((1, Cout), lambda b, t: (0, 0)),
            ],
            out_specs=out_spec,
        ),
        compiler_params=pltpu.CompilerParams(
            dimension_semantics=("parallel", "parallel")),
    )(xi_g, xj_g, w_i, w_j, b_row)

    out_nchw = out if nchw_out else jnp.transpose(out, (0, 2, 1))   # (B, Cout, N)
    return out_nchw[:, :, :, None].astype(x.dtype)                  # (B, Cout, N, 1)


def _reference(x, edge_index, weight, bias):
    """Pure-JAX reference matching the PyTorch forward (f32)."""
    x_nodes = jnp.transpose(x[:, :, :, 0], (0, 2, 1))               # (B, N, C)
    gather = jax.vmap(lambda xb, ib: xb[ib])
    x_i = gather(x_nodes, edge_index[1])                            # (B, N, K, C)
    x_j = gather(x_nodes, edge_index[0])
    feat = jnp.concatenate([x_i, x_j - x_i], axis=-1)               # (B, N, K, 2C)
    yy = jnp.einsum('bnkc,oc->bnko', feat, weight) + bias           # (B, N, K, Cout)
    yy = jnp.maximum(yy, 0.0)
    yy = jnp.max(yy, axis=2)                                        # (B, N, Cout)
    return jnp.transpose(yy, (0, 2, 1))[:, :, :, None]              # (B, Cout, N, 1)


if __name__ == "__main__":
    B, C, N, K = 2, 64, 128, 8
    Cout = 128

    key = jax.random.PRNGKey(0)
    kx, kj, kw, kb = jax.random.split(key, 4)

    x = jax.random.normal(kx, (B, C, N, 1), dtype=jnp.float32)
    # edge_index[0] = neighbor indices, edge_index[1] = center indices
    idx_j = jax.random.randint(kj, (B, N, K), 0, N, dtype=jnp.int32)
    idx_i = jnp.broadcast_to(jnp.arange(N, dtype=jnp.int32)[None, :, None], (B, N, K))
    edge_index = jnp.stack([idx_j, idx_i], axis=0)                  # (2, B, N, K)

    # 1x1-conv parameters: Conv2d(2C, Cout, 1, bias=True)
    weight = jax.random.normal(kw, (Cout, 2 * C), dtype=jnp.float32) * 0.05
    bias = jax.random.normal(kb, (Cout,), dtype=jnp.float32) * 0.1

    ref = _reference(x, edge_index, weight, bias)

    # f32 compute path (tolerance covers the MXU's bf16-based f32 passes).
    out_f32 = edge_graph_conv2d(x, edge_index, weight, bias, compute_dtype=jnp.float32)
    out_f32 = jax.block_until_ready(out_f32)
    assert out_f32.shape == (B, Cout, N, 1), out_f32.shape
    assert jnp.allclose(out_f32, ref, atol=2e-2, rtol=2e-2), "f32 kernel mismatch vs reference"

    # bf16 compute path (default): halves HBM bytes of the gathered edge features.
    out_bf16 = edge_graph_conv2d(x, edge_index, weight, bias)
    out_bf16 = jax.block_until_ready(out_bf16)
    assert out_bf16.shape == (B, Cout, N, 1), out_bf16.shape
    assert jnp.allclose(out_bf16, ref, atol=6e-2, rtol=6e-2), "bf16 kernel mismatch vs reference"

    print("KERNEL_OK")
</pallas_src>

<mosaic_0001>
module attributes {stable_mosaic.version = 11 : i64} {
  func.func @_edgeconv_kernel(%arg0: i32, %arg1: i32, %arg2: memref<1x8x128x64xf32, #tpu.memory_space<vmem>>, %arg3: memref<1x8x128x64xf32, #tpu.memory_space<vmem>>, %arg4: memref<64x128xf32, #tpu.memory_space<vmem>>, %arg5: memref<64x128xf32, #tpu.memory_space<vmem>>, %arg6: memref<1x128xf32, #tpu.memory_space<vmem>>, %arg7: memref<1x128x128xf32, #tpu.memory_space<vmem>>) attributes {dimension_semantics = [#tpu.dimension_semantics<parallel>, #tpu.dimension_semantics<parallel>], iteration_bounds = array<i64: 2, 1>, scalar_prefetch = 0 : i64, scratch_operands = 0 : i64, tpu.core_type = #tpu.core_type<tc>, window_params = [{transform_indices = @transform_0, window_bounds = array<i64: 1, 8, 128, 64>}, {transform_indices = @transform_1, window_bounds = array<i64: 1, 8, 128, 64>}, {pipeline_mode = #tpu.pipeline_mode<synchronous>, transform_indices = @transform_2, window_bounds = array<i64: 64, 128>}, {pipeline_mode = #tpu.pipeline_mode<synchronous>, transform_indices = @transform_3, window_bounds = array<i64: 64, 128>}, {pipeline_mode = #tpu.pipeline_mode<synchronous>, transform_indices = @transform_4, window_bounds = array<i64: 1, 128>}, {transform_indices = @transform_5, window_bounds = array<i64: 1, 128, 128>}]} {
    %c0 = arith.constant 0 : index
    %c0_0 = arith.constant 0 : index
    %c0_1 = arith.constant 0 : index
    %c0_2 = arith.constant 0 : index
    %0 = vector.load %arg2[%c0, %c0_0, %c0_1, %c0_2] : memref<1x8x128x64xf32, #tpu.memory_space<vmem>>, vector<1x8x128x64xf32>
    %1 = vector.shape_cast %0 : vector<1x8x128x64xf32> to vector<8x128x64xf32>
    %2 = vector.shape_cast %1 : vector<8x128x64xf32> to vector<1024x64xf32>
    %c0_3 = arith.constant 0 : index
    %c0_4 = arith.constant 0 : index
    %c0_5 = arith.constant 0 : index
    %c0_6 = arith.constant 0 : index
    %3 = vector.load %arg3[%c0_3, %c0_4, %c0_5, %c0_6] : memref<1x8x128x64xf32, #tpu.memory_space<vmem>>, vector<1x8x128x64xf32>
    %4 = vector.shape_cast %3 : vector<1x8x128x64xf32> to vector<8x128x64xf32>
    %5 = vector.shape_cast %4 : vector<8x128x64xf32> to vector<1024x64xf32>
    %c0_7 = arith.constant 0 : index
    %c0_8 = arith.constant 0 : index
    %6 = vector.load %arg4[%c0_7, %c0_8] : memref<64x128xf32, #tpu.memory_space<vmem>>, vector<64x128xf32>
    %cst = arith.constant dense<0.000000e+00> : vector<1024x128xf32>
    %7 = tpu.matmul %2, %6, %cst {dimension_numbers = #tpu.dot_dimension_numbers<[1], [0], [0], [1], [0, 0, 1, 1], [], []>} : vector<1024x64xf32>, vector<64x128xf32>, vector<1024x128xf32> -> vector<1024x128xf32>
    %c0_9 = arith.constant 0 : index
    %c0_10 = arith.constant 0 : index
    %8 = vector.load %arg5[%c0_9, %c0_10] : memref<64x128xf32, #tpu.memory_space<vmem>>, vector<64x128xf32>
    %cst_11 = arith.constant dense<0.000000e+00> : vector<1024x128xf32>
    %9 = tpu.matmul %5, %8, %cst_11 {dimension_numbers = #tpu.dot_dimension_numbers<[1], [0], [0], [1], [0, 0, 1, 1], [], []>} : vector<1024x64xf32>, vector<64x128xf32>, vector<1024x128xf32> -> vector<1024x128xf32>
    %10 = arith.addf %7, %9 : vector<1024x128xf32>
    %11 = vector.shape_cast %10 : vector<1024x128xf32> to vector<8x128x128xf32>
    %cst_12 = arith.constant dense<0xFF800000> : vector<128x128xf32>
    %12 = vector.multi_reduction <maximumf>, %11, %cst_12 [0] : vector<8x128x128xf32> to vector<128x128xf32>
    %c0_13 = arith.constant 0 : index
    %c0_14 = arith.constant 0 : index
    %13 = vector.load %arg6[%c0_13, %c0_14] : memref<1x128xf32, #tpu.memory_space<vmem>>, vector<1x128xf32>
    %14 = vector.broadcast %13 : vector<1x128xf32> to vector<128x128xf32>
    %15 = arith.addf %12, %14 : vector<128x128xf32>
    %cst_15 = arith.constant 0.000000e+00 : f32
    %16 = vector.broadcast %cst_15 : f32 to vector<128x128xf32>
    %17 = arith.maximumf %15, %16 : vector<128x128xf32>
    %18 = tpu.transpose %17, [1, 0] : vector<128x128xf32> -> vector<128x128xf32>
    %c0_16 = arith.constant 0 : index
    %c0_17 = arith.constant 0 : index
    %c0_18 = arith.constant 0 : index
    %19 = vector.load %arg7[%c0_16, %c0_17, %c0_18] : memref<1x128x128xf32, #tpu.memory_space<vmem>>, vector<1x128x128xf32>
    %20 = vector.shape_cast %19 : vector<1x128x128xf32> to vector<128x128xf32>
    %21 = vector.shape_cast %18 : vector<128x128xf32> to vector<1x128x128xf32>
    tpu.vector_store %arg7[%c0_16, %c0_17, %c0_18], %21 {strides = array<i32>} : memref<1x128x128xf32, #tpu.memory_space<vmem>>, vector<1x128x128xf32>,
    return
  }
  func.func @transform_0(%arg0: i32, %arg1: i32) -> (i32, i32, i32, i32) {
    %c0_i32 = arith.constant 0 : i32
    %c0_i32_0 = arith.constant 0 : i32
    %c0_i32_1 = arith.constant 0 : i32
    return %arg0, %c0_i32, %arg1, %c0_i32_0 : i32, i32, i32, i32
  }
  func.func @transform_1(%arg0: i32, %arg1: i32) -> (i32, i32, i32, i32) {
    %c0_i32 = arith.constant 0 : i32
    %c0_i32_0 = arith.constant 0 : i32
    %c0_i32_1 = arith.constant 0 : i32
    return %arg0, %c0_i32, %arg1, %c0_i32_0 : i32, i32, i32, i32
  }
  func.func @transform_2(%arg0: i32, %arg1: i32) -> (i32, i32) {
    %c0_i32 = arith.constant 0 : i32
    %c0_i32_0 = arith.constant 0 : i32
    %c0_i32_1 = arith.constant 0 : i32
    return %c0_i32, %c0_i32_0 : i32, i32
  }
  func.func @transform_3(%arg0: i32, %arg1: i32) -> (i32, i32) {
    %c0_i32 = arith.constant 0 : i32
    %c0_i32_0 = arith.constant 0 : i32
    %c0_i32_1 = arith.constant 0 : i32
    return %c0_i32, %c0_i32_0 : i32, i32
  }
  func.func @transform_4(%arg0: i32, %arg1: i32) -> (i32, i32) {
    %c0_i32 = arith.constant 0 : i32
    %c0_i32_0 = arith.constant 0 : i32
    %c0_i32_1 = arith.constant 0 : i32
    return %c0_i32, %c0_i32_0 : i32, i32
  }
  func.func @transform_5(%arg0: i32, %arg1: i32) -> (i32, i32, i32) {
    %c0_i32 = arith.constant 0 : i32
    %c0_i32_0 = arith.constant 0 : i32
    return %arg0, %c0_i32, %arg1 : i32, i32, i32
  }
}

</mosaic_0001>

<bundles_post_ra>
// kernel: tpu_custom_call.1
= control target key start
LH: loop header
LB: loop body
LE: loop exit
PB: predicated region body
PF: predicated region fallthrough
CT: control target
= control target key end

     0   :  { %10 = vsyncpa [#allocation3], 0  ;;  %s5549_s0 = inlined_call_operand.vmem [shape: f32[2,8,128,64], index: 0, kind: input, shape index: {}]   ;;  %s5550_s1 = inlined_call_operand.vmem [shape: f32[2,8,128,64], index: 1, kind: input, shape index: {}]   ;;  %s5551_s2 = inlined_call_operand.vmem [shape: f32[64,128], index: 2, kind: input, shape index: {}]   ;;  %s5552_s3 = inlined_call_operand.vmem [shape: f32[64,128], index: 3, kind: input, shape index: {}]   ;;  %s5553_s4 = inlined_call_operand.vmem [shape: f32[1,128], index: 4, kind: input, shape index: {}]   ;;  %s5554_s5 = inlined_call_operand.hbm [shape: f32[2,128,128], index: 5, kind: output, shape index: {}]  }
   0x1   :  { %12 = vsyncpa [#allocation3 + $0x1], 0  ;;  %s4343_s18 = smov 0   ;;  %s4345_s19 = smov 0  }
   0x2   :  { %s4347_s20 = smov 0   ;;  %s4349_s21 = smov 0  }
   0x3   :  { %s4351_s22 = smov 0   ;;  %s4353_s23 = smov 0  }
   0x4 LB: > { %s3050_s24 = sadd.s32 4294967295, %s4308_s23   ;;  %s3051_s25 = sadd.s32 4294967294, %s4308_s23   ;;  %s4308_s23 = sphi %s4353_s23, %s18_s23   ;;  %s4304_s22 = sphi %s4351_s22, %s5561_s22   ;;  %s4300_s21 = sphi %s4349_s21, %s5560_s21   ;;  %s4296_s20 = sphi %s4347_s20, %s5559_s20   ;;  %s4292_s19 = sphi %s4345_s19, %s5558_s19   ;;  %s4288_s18 = sphi %s4343_s18, %s5557_s18  }
   0x5   : > { %s30_s26 = sadd.s32 1, %s4304_s22  ;;  %s158_s27 = sadd.s32 1, %s4296_s20 }
   0x6   : > { %p32_p0 = scmp.ge.s32.totalorder %s30_s26, 2  ;;  %p168_p1 = scmp.ne.s32.totalorder %s4296_s20, %s4292_s19 }
   0x7   : > { %p169_p2 = scmp.eq.s32.totalorder %s3050_s24, 1  ;;  %p174_p3 = scmp.ne.s32.totalorder %s4292_s19, %s4288_s18 }
   0x8   : > { %s5563_s26 = smov (%p32_p0, %s30_s26), 0  ;;  %p175_p5 = scmp.eq.s32.totalorder %s3051_s25, 1 }
   0x9   : > { %p4383_p4 = por %p169_p2, %p168_p1  ;;  %s153_s29 = ssub.s32 %s4304_s22, %s5563_s26 }
   0xa   : > { %p3054_p6 = scmp.ge.s32.totalorder %s4308_s23, 1  ;;  %p156_p7 = scmp.eq.s32.totalorder %s153_s29, 0 }
   0xb   : > { %p4390_p8 = por %p175_p5, %p174_p3  ;;  %p228_p9 = scmp.lt.s32.totalorder %s4308_s23, 3 }
   0xc   : > { %s4396_s6 = scalar_select %p156_p7, %s4296_s20, %s158_s27  }
   0xd   : > { %p229_p10 = pnand %p3054_p6, %p228_p9 }
   0xe   : > { %v553_v0 = vld [vmem:[%s5552_s3] sm:$0xff] (!%p229_p10)  ;;  %v554_v1 = vld [vmem:[%s5552_s3 + $0x8] sm:$0xff] (!%p229_p10)  ;;  %p270_p11 = scmp.lt.s32.totalorder (!%p229_p10), %s4300_s21, 1  ;;  %v555_v5 = vld [vmem:[%s5552_s3 + $0x10] sm:$0xff] (!%p229_p10)  ;;  %vm561_vm0 = vcmask (!%p229_p10), 523264   ;;  %s266_s25 = sand.u32 (!%p229_p10), 1, %s4292_s19  }
   0xf   : > { %232 = sbr.rel (%p229_p10) target bundleno = 683 (0x2ab), region = 40  ;;  %v545_v2 = vld [vmem:[%s5551_s2] sm:$0xff] (!%p229_p10)  ;;  %v4013_v3 = vpack.c.bf16 (!%p229_p10), %v554_v1, %v553_v0  ;;  %v546_v4 = vld [vmem:[%s5551_s2 + $0x8] sm:$0xff] (!%p229_p10)  ;;  %v556_v6 = vld [vmem:[%s5552_s3 + $0x18] sm:$0xff] (!%p229_p10)  ;;  %s3055_s27 = sshll.u32 (!%p229_p10), %s266_s25, 7 }
  0x10   : > { %v4029_v7 = vpack.c.bf16 (!%p229_p10), %v546_v4, %v545_v2  ;;  %v4017_v8 = vpack.c.bf16 (!%p229_p10), %v556_v6, %v555_v5  ;;  %v547_v9 = vld [vmem:[%s5551_s2 + $0x10] sm:$0xff] (!%p229_p10)  ;;  %v548_v10 = vld [vmem:[%s5551_s2 + $0x18] sm:$0xff] (!%p229_p10)  ;;  %v557_v11 = vld [vmem:[%s5552_s3 + $0x20] sm:$0xff] (!%p229_p10)  ;;  %s5474_s29 = scalar_lea.vmem (!%p229_p10), [#allocation2], %s3055_s27  ;;  %s5503_s12 = scalar_lea.sflag (!%p229_p10), [#allocation3], %s266_s25 }
  0x11   : > { %4014 = vmatprep.subr.bf16.mxu1 (!%p229_p10), %v4013_v3  ;;  %v4033_v12 = vpack.c.bf16 (!%p229_p10), %v548_v10, %v547_v9  ;;  %v558_v13 = vld [vmem:[%s5552_s3 + $0x28] sm:$0xff] (!%p229_p10)  ;;  %v549_v14 = vld [vmem:[%s5551_s2 + $0x20] sm:$0xff] (!%p229_p10)  ;;  %v559_v17 = vld [vmem:[%s5552_s3 + $0x30] sm:$0xff] (!%p229_p10)  ;;  %s2954_s8 = sshll.u32 (!%p229_p10), %s5474_s29, 4  ;;  %s5498_s8 = int_to_ptr.vmem [resolvable:$true] %s2954_s8 }
  0x12   : > { %v550_v15 = vld [vmem:[%s5551_s2 + $0x28] sm:$0xff] (!%p229_p10)  ;;  %4030 = vmatprep.subr.bf16.mxu0 (!%p229_p10), %v4029_v7  ;;  %4016 = vmatpush3.bf16.msra.mxu1 (!%p229_p10), %v4013_v3  ;;  %v4021_v16 = vpack.c.bf16 (!%p229_p10), %v558_v13, %v557_v11  ;;  %v560_v19 = vld [vmem:[%s5552_s3 + $0x38] sm:$0xff] (!%p229_p10)  ;;  %v551_v22 = vld [vmem:[%s5551_s2 + $0x30] sm:$0xff] (!%p229_p10)  ;;  %s4230_s13 = scalar_lea.vmem (!%p229_p10), %s5498_s8, 2048 }
  0x13   : > { %4032 = vmatpush3.bf16.msra.mxu0 (!%p229_p10), %v4029_v7  ;;  %4018 = vmatprep.subr.bf16.mxu1 (!%p229_p10), %v4017_v8  ;;  %v4037_v18 = vpack.c.bf16 (!%p229_p10), %v550_v15, %v549_v14  ;;  %v552_v23 = vld [vmem:[%s5551_s2 + $0x38] sm:$0xff] (!%p229_p10)  ;;  %v4025_v24 = vpack.c.bf16 (!%p229_p10), %v560_v19, %v559_v17  ;;  %p4231_p12 = scmp.ne.s32.totalorder (!%p229_p10), %s5498_s8, %s4230_s13 }
  0x14   : > { %4034 = vmatprep.subr.bf16.mxu0 (!%p229_p10), %v4033_v12  ;;  %v4041_v25 = vpack.c.bf16 (!%p229_p10), %v552_v23, %v551_v22 }
  0x15   : > { %p4232_p13 = pnand (!%p229_p10), %p4231_p12, %p4383_p4 }
  0x16   : > { %s271_s10 = scalar_select %p270_p11, %s4300_s21, 1  ;;  %4020 = vmatpush3.bf16.msra.mxu1 %v4017_v8 }
  0x17   : > { %4036 = vmatpush3.bf16.msra.mxu0 %v4033_v12  ;;  %4022 = vmatprep.subr.bf16.mxu1 %v4021_v16  ;;  %p4233_p0 = pneg %p4232_p13 }
  0x18   : > { %s3322_s17 = sshll.u32 %s271_s10, 10  ;;  %4038 = vmatprep.subr.bf16.mxu0 %v4037_v18 }
  0x19   : > { %s4442_s7 = scalar_lea.vmem %s5550_s1, %s3322_s17  ;;  %s4447_s11 = scalar_lea.vmem %s5549_s0, %s3322_s17 }
  0x1a   : > { %v417_v20 = vld [vmem:[%s4442_s7] sm:$0xff]  ;;  %4024 = vmatpush3.bf16.msra.mxu1 %v4021_v16  ;;  %v418_v26 = vld [vmem:[%s4442_s7 + $0x8] sm:$0xff]  ;;  %v419_v28 = vld [vmem:[%s4442_s7 + $0x10] sm:$0xff] }
  0x1b   : > { %v289_v21 = vld [vmem:[%s4447_s11] sm:$0xff]  ;;  %3613 = vmatprep.mubr.msk.f32.mxu1 %vm561_vm0, %v417_v20  ;;  %4040 = vmatpush3.bf16.msra.mxu0 %v4037_v18  ;;  %v290_v27 = vld [vmem:[%s4447_s11 + $0x8] sm:$0xff]  ;;  %v291_v29 = vld [vmem:[%s4447_s11 + $0x10] sm:$0xff] }
  0x1c   : > { %3821 = vmatprep.mubr.msk.f32.mxu0 %vm561_vm0, %v289_v21  ;;  %4026 = vmatprep.subr.bf16.mxu1 %v4025_v24  ;;  %v420_v30 = vld [vmem:[%s4442_s7 + $0x18] sm:$0xff]  ;;  %v421_v32 = vld [vmem:[%s4442_s7 + $0x20] sm:$0xff]  ;;  %v422_v34 = vld [vmem:[%s4442_s7 + $0x28] sm:$0xff] }
  0x1d   : > { %4042 = vmatprep.subr.bf16.mxu0 %v4041_v25  ;;  %v292_v31 = vld [vmem:[%s4447_s11 + $0x18] sm:$0xff]  ;;  %v293_v33 = vld [vmem:[%s4447_s11 + $0x20] sm:$0xff]  ;;  %v294_v35 = vld [vmem:[%s4447_s11 + $0x28] sm:$0xff] }
  0x1e   : > { %4028 = vmatpush3.bf16.msra.mxu1 %v4025_v24  ;;  %v423_v36 = vld [vmem:[%s4442_s7 + $0x30] sm:$0xff]  ;;  %v424_v38 = vld [vmem:[%s4442_s7 + $0x38] sm:$0xff]  ;;  %v425_v40 = vld [vmem:[%s4442_s7 + $0x40] sm:$0xff] }
  0x1f   : > { %4044 = vmatpush3.bf16.msra.mxu0 %v4041_v25  ;;  %v295_v37 = vld [vmem:[%s4447_s11 + $0x30] sm:$0xff]  ;;  %v296_v39 = vld [vmem:[%s4447_s11 + $0x38] sm:$0xff]  ;;  %v297_v41 = vld [vmem:[%s4447_s11 + $0x40] sm:$0xff] }
  0x20   : > { %v426_v42 = vld [vmem:[%s4442_s7 + $0x48] sm:$0xff]  ;;  %v427_v44 = vld [vmem:[%s4442_s7 + $0x50] sm:$0xff]  ;;  %v428_v46 = vld [vmem:[%s4442_s7 + $0x58] sm:$0xff] }
  0x21   : > { %3614 = vmatmul.mubr.msk.f32.vlgmr.msra.gmra.mrb[0].mxu1 %vm561_vm0, %v418_v26  ;;  %v298_v43 = vld [vmem:[%s4447_s11 + $0x48] sm:$0xff]  ;;  %v299_v45 = vld [vmem:[%s4447_s11 + $0x50] sm:$0xff]  ;;  %v300_v47 = vld [vmem:[%s4447_s11 + $0x58] sm:$0xff] }
  0x22   : > { %3822 = vmatmul.mubr.msk.f32.vlgmr.msra.gmra.mrb[0].mxu0 %vm561_vm0, %v290_v27  ;;  %3616 = vmatprep.mubr.msk.f32.mxu1 %vm561_vm0, %v419_v28  ;;  %v429_v48 = vld [vmem:[%s4442_s7 + $0x60] sm:$0xff]  ;;  %v430_v50 = vld [vmem:[%s4442_s7 + $0x68] sm:$0xff]  ;;  %v431_v52 = vld [vmem:[%s4442_s7 + $0x70] sm:$0xff] }
  0x23   : > { %3824 = vmatprep.mubr.msk.f32.mxu0 %vm561_vm0, %v291_v29  ;;  %v301_v49 = vld [vmem:[%s4447_s11 + $0x60] sm:$0xff]  ;;  %v302_v51 = vld [vmem:[%s4447_s11 + $0x68] sm:$0xff]  ;;  %v303_v53 = vld [vmem:[%s4447_s11 + $0x70] sm:$0xff] }
  0x24   : > { %v432_v54 = vld [vmem:[%s4442_s7 + $0x78] sm:$0xff]  ;;  %v433_v56 = vld [vmem:[%s4442_s7 + $0x80] sm:$0xff]  ;;  %v434_v58 = vld [vmem:[%s4442_s7 + $0x88] sm:$0xff] }
  0x25   : > { %3617 = vmatmul.mubr.msk.f32.gmra.mrb[2].mxu1 %vm561_vm0, %v420_v30  ;;  %v304_v55 = vld [vmem:[%s4447_s11 + $0x78] sm:$0xff]  ;;  %v305_v57 = vld [vmem:[%s4447_s11 + $0x80] sm:$0xff]  ;;  %v306_v59 = vld [vmem:[%s4447_s11 + $0x88] sm:$0xff] }
  0x26   : > { %3825 = vmatmul.mubr.msk.f32.gmra.mrb[2].mxu0 %vm561_vm0, %v292_v31  ;;  %3619 = vmatprep.mubr.msk.f32.mxu1 %vm561_vm0, %v421_v32  ;;  %v435_v60 = vld [vmem:[%s4442_s7 + $0x90] sm:$0xff]  ;;  %v436_v62 = vld [vmem:[%s4442_s7 + $0x98] sm:$0xff]  ;;  %v437_v0 = vld [vmem:[%s4442_s7 + $0xa0] sm:$0xff] }
  0x27   : > { %3827 = vmatprep.mubr.msk.f32.mxu0 %vm561_vm0, %v293_v33  ;;  %v307_v61 = vld [vmem:[%s4447_s11 + $0x90] sm:$0xff]  ;;  %v308_v63 = vld [vmem:[%s4447_s11 + $0x98] sm:$0xff]  ;;  %v309_v1 = vld [vmem:[%s4447_s11 + $0xa0] sm:$0xff] }
  0x28   : > { %v438_v2 = vld [vmem:[%s4442_s7 + $0xa8] sm:$0xff]  ;;  %v439_v4 = vld [vmem:[%s4442_s7 + $0xb0] sm:$0xff]  ;;  %v440_v6 = vld [vmem:[%s4442_s7 + $0xb8] sm:$0xff] }
  0x29   : > { %3620 = vmatmul.mubr.msk.f32.gmra.mrb[4].mxu1 %vm561_vm0, %v422_v34  ;;  %v310_v3 = vld [vmem:[%s4447_s11 + $0xa8] sm:$0xff]  ;;  %v311_v5 = vld [vmem:[%s4447_s11 + $0xb0] sm:$0xff]  ;;  %v312_v7 = vld [vmem:[%s4447_s11 + $0xb8] sm:$0xff] }
  0x2a   : > { %3828 = vmatmul.mubr.msk.f32.gmra.mrb[4].mxu0 %vm561_vm0, %v294_v35  ;;  %3622 = vmatprep.mubr.msk.f32.mxu1 %vm561_vm0, %v423_v36  ;;  %v441_v8 = vld [vmem:[%s4442_s7 + $0xc0] sm:$0xff]  ;;  %v442_v10 = vld [vmem:[%s4442_s7 + $0xc8] sm:$0xff]  ;;  %v443_v12 = vld [vmem:[%s4442_s7 + $0xd0] sm:$0xff] }
  0x2b   : > { %3830 = vmatprep.mubr.msk.f32.mxu0 %vm561_vm0, %v295_v37  ;;  %v313_v9 = vld [vmem:[%s4447_s11 + $0xc0] sm:$0xff]  ;;  %v314_v11 = vld [vmem:[%s4447_s11 + $0xc8] sm:$0xff]  ;;  %v315_v13 = vld [vmem:[%s4447_s11 + $0xd0] sm:$0xff] }
  0x2c   : > { %v444_v14 = vld [vmem:[%s4442_s7 + $0xd8] sm:$0xff]  ;;  %v445_v16 = vld [vmem:[%s4442_s7 + $0xe0] sm:$0xff]  ;;  %v446_v18 = vld [vmem:[%s4442_s7 + $0xe8] sm:$0xff] }
  0x2d   : > { %3623 = vmatmul.mubr.msk.f32.gmra.mrb[6].mxu1 %vm561_vm0, %v424_v38  ;;  %v316_v15 = vld [vmem:[%s4447_s11 + $0xd8] sm:$0xff]  ;;  %v317_v17 = vld [vmem:[%s4447_s11 + $0xe0] sm:$0xff]  ;;  %v318_v19 = vld [vmem:[%s4447_s11 + $0xe8] sm:$0xff] }
  0x2e   : > { %3831 = vmatmul.mubr.msk.f32.gmra.mrb[6].mxu0 %vm561_vm0, %v296_v39  ;;  %3625 = vmatprep.mubr.msk.f32.mxu1 %vm561_vm0, %v425_v40  ;;  %v447_v20 = vld [vmem:[%s4442_s7 + $0xf0] sm:$0xff]  ;;  %v448_v22 = vld [vmem:[%s4442_s7 + $0xf8] sm:$0xff]  ;;  %v449_v24 = vld [vmem:[%s4442_s7 + $0x100] sm:$0xff] }
  0x2f   : > { %3833 = vmatprep.mubr.msk.f32.mxu0 %vm561_vm0, %v297_v41  ;;  %v319_v21 = vld [vmem:[%s4447_s11 + $0xf0] sm:$0xff]  ;;  %v320_v23 = vld [vmem:[%s4447_s11 + $0xf8] sm:$0xff]  ;;  %v321_v25 = vld [vmem:[%s4447_s11 + $0x100] sm:$0xff] }
  0x30   : > { %v450_v26 = vld [vmem:[%s4442_s7 + $0x108] sm:$0xff]  ;;  %v451_v28 = vld [vmem:[%s4442_s7 + $0x110] sm:$0xff]  ;;  %v452_v30 = vld [vmem:[%s4442_s7 + $0x118] sm:$0xff] }
  0x31   : > { %3626 = vmatmul.mubr.msk.f32.gmra.mrb[8].mxu1 %vm561_vm0, %v426_v42  ;;  %v322_v27 = vld [vmem:[%s4447_s11 + $0x108] sm:$0xff]  ;;  %v323_v29 = vld [vmem:[%s4447_s11 + $0x110] sm:$0xff]  ;;  %v324_v31 = vld [vmem:[%s4447_s11 + $0x118] sm:$0xff] }
  0x32   : > { %3834 = vmatmul.mubr.msk.f32.gmra.mrb[8].mxu0 %vm561_vm0, %v298_v43  ;;  %3628 = vmatprep.mubr.msk.f32.mxu1 %vm561_vm0, %v427_v44  ;;  %v453_v32 = vld [vmem:[%s4442_s7 + $0x120] sm:$0xff]  ;;  %v454_v34 = vld [vmem:[%s4442_s7 + $0x128] sm:$0xff]  ;;  %v455_v36 = vld [vmem:[%s4442_s7 + $0x130] sm:$0xff] }
  0x33   : > { %3836 = vmatprep.mubr.msk.f32.mxu0 %vm561_vm0, %v299_v45  ;;  %v325_v33 = vld [vmem:[%s4447_s11 + $0x120] sm:$0xff]  ;;  %v326_v35 = vld [vmem:[%s4447_s11 + $0x128] sm:$0xff]  ;;  %v327_v37 = vld [vmem:[%s4447_s11 + $0x130] sm:$0xff] }
  0x34   : > { %v456_v38 = vld [vmem:[%s4442_s7 + $0x138] sm:$0xff]  ;;  %v457_v40 = vld [vmem:[%s4442_s7 + $0x140] sm:$0xff]  ;;  %v458_v42 = vld [vmem:[%s4442_s7 + $0x148] sm:$0xff] }
  0x35   : > { %3629 = vmatmul.mubr.msk.f32.gmra.mrb[10].mxu1 %vm561_vm0, %v428_v46  ;;  %v328_v39 = vld [vmem:[%s4447_s11 + $0x138] sm:$0xff]  ;;  %v329_v41 = vld [vmem:[%s4447_s11 + $0x140] sm:$0xff]  ;;  %v330_v43 = vld [vmem:[%s4447_s11 + $0x148] sm:$0xff] }
  0x36   : > { %3837 = vmatmul.mubr.msk.f32.gmra.mrb[10].mxu0 %vm561_vm0, %v300_v47  ;;  %3631 = vmatprep.mubr.msk.f32.mxu1 %vm561_vm0, %v429_v48  ;;  %v459_v44 = vld [vmem:[%s4442_s7 + $0x150] sm:$0xff]  ;;  %v460_v46 = vld [vmem:[%s4442_s7 + $0x158] sm:$0xff]  ;;  %v461_v48 = vld [vmem:[%s4442_s7 + $0x160] sm:$0xff] }
  0x37   : > { %3839 = vmatprep.mubr.msk.f32.mxu0 %vm561_vm0, %v301_v49  ;;  %v331_v45 = vld [vmem:[%s4447_s11 + $0x150] sm:$0xff]  ;;  %v332_v47 = vld [vmem:[%s4447_s11 + $0x158] sm:$0xff]  ;;  %v333_v49 = vld [vmem:[%s4447_s11 + $0x160] sm:$0xff] }
  0x39   : > { %3632 = vmatmul.mubr.msk.f32.gmra.mrb[12].mxu1 %vm561_vm0, %v430_v50  ;;  %v462_v50 = vld [vmem:[%s4442_s7 + $0x168] sm:$0xff] }
  0x3a   : > { %3840 = vmatmul.mubr.msk.f32.gmra.mrb[12].mxu0 %vm561_vm0, %v302_v51  ;;  %3634 = vmatprep.mubr.msk.f32.mxu1 %vm561_vm0, %v431_v52  ;;  %v334_v51 = vld [vmem:[%s4447_s11 + $0x168] sm:$0xff]  ;;  %v463_v52 = vld [vmem:[%s4442_s7 + $0x170] sm:$0xff] }
  0x3b   : > { %3842 = vmatprep.mubr.msk.f32.mxu0 %vm561_vm0, %v303_v53  ;;  %v335_v53 = vld [vmem:[%s4447_s11 + $0x170] sm:$0xff] }
  0x3d   : > { %3635 = vmatmul.mubr.msk.f32.gmra.mrb[14].mxu1 %vm561_vm0, %v432_v54  ;;  %v464_v54 = vld [vmem:[%s4442_s7 + $0x178] sm:$0xff] }
  0x3e   : > { %3843 = vmatmul.mubr.msk.f32.gmra.mrb[14].mxu0 %vm561_vm0, %v304_v55  ;;  %3637 = vmatprep.mubr.msk.f32.mxu1 %vm561_vm0, %v433_v56  ;;  %v336_v55 = vld [vmem:[%s4447_s11 + $0x178] sm:$0xff]  ;;  %v465_v56 = vld [vmem:[%s4442_s7 + $0x180] sm:$0xff] }
  0x3f   : > { %3845 = vmatprep.mubr.msk.f32.mxu0 %vm561_vm0, %v305_v57  ;;  %v337_v57 = vld [vmem:[%s4447_s11 + $0x180] sm:$0xff] }
  0x41   : > { %3638 = vmatmul.mubr.msk.f32.gmra.mrb[16].mxu1 %vm561_vm0, %v434_v58  ;;  %v466_v58 = vld [vmem:[%s4442_s7 + $0x188] sm:$0xff] }
  0x42   : > { %3846 = vmatmul.mubr.msk.f32.gmra.mrb[16].mxu0 %vm561_vm0, %v306_v59  ;;  %3640 = vmatprep.mubr.msk.f32.mxu1 %vm561_vm0, %v435_v60  ;;  %v338_v59 = vld [vmem:[%s4447_s11 + $0x188] sm:$0xff]  ;;  %v467_v60 = vld [vmem:[%s4442_s7 + $0x190] sm:$0xff] }
  0x43   : > { %3848 = vmatprep.mubr.msk.f32.mxu0 %vm561_vm0, %v307_v61  ;;  %v339_v61 = vld [vmem:[%s4447_s11 + $0x190] sm:$0xff] }
  0x45   : > { %3641 = vmatmul.mubr.msk.f32.gmra.mrb[18].mxu1 %vm561_vm0, %v436_v62  ;;  %v468_v62 = vld [vmem:[%s4442_s7 + $0x198] sm:$0xff] }
  0x46   : > { %3849 = vmatmul.mubr.msk.f32.gmra.mrb[18].mxu0 %vm561_vm0, %v308_v63  ;;  %3643 = vmatprep.mubr.msk.f32.mxu1 %vm561_vm0, %v437_v0  ;;  %v340_v63 = vld [vmem:[%s4447_s11 + $0x198] sm:$0xff]  ;;  %v469_v0 = vld [vmem:[%s4442_s7 + $0x1a0] sm:$0xff] }
  0x47   : > { %3851 = vmatprep.mubr.msk.f32.mxu0 %vm561_vm0, %v309_v1  ;;  %v341_v1 = vld [vmem:[%s4447_s11 + $0x1a0] sm:$0xff] }
  0x49   : > { %3644 = vmatmul.mubr.msk.f32.gmra.mrb[20].mxu1 %vm561_vm0, %v438_v2  ;;  %v470_v2 = vld [vmem:[%s4442_s7 + $0x1a8] sm:$0xff] }
  0x4a   : > { %3852 = vmatmul.mubr.msk.f32.gmra.mrb[20].mxu0 %vm561_vm0, %v310_v3  ;;  %3646 = vmatprep.mubr.msk.f32.mxu1 %vm561_vm0, %v439_v4  ;;  %v342_v3 = vld [vmem:[%s4447_s11 + $0x1a8] sm:$0xff]  ;;  %v471_v4 = vld [vmem:[%s4442_s7 + $0x1b0] sm:$0xff] }
  0x4b   : > { %3854 = vmatprep.mubr.msk.f32.mxu0 %vm561_vm0, %v311_v5  ;;  %v343_v5 = vld [vmem:[%s4447_s11 + $0x1b0] sm:$0xff] }
  0x4d   : > { %3647 = vmatmul.mubr.msk.f32.gmra.mrb[22].mxu1 %vm561_vm0, %v440_v6  ;;  %v472_v6 = vld [vmem:[%s4442_s7 + $0x1b8] sm:$0xff] }
  0x4e   : > { %3855 = vmatmul.mubr.msk.f32.gmra.mrb[22].mxu0 %vm561_vm0, %v312_v7  ;;  %3649 = vmatprep.mubr.msk.f32.mxu1 %vm561_vm0, %v441_v8  ;;  %v344_v7 = vld [vmem:[%s4447_s11 + $0x1b8] sm:$0xff]  ;;  %v473_v8 = vld [vmem:[%s4442_s7 + $0x1c0] sm:$0xff] }
  0x4f   : > { %3857 = vmatprep.mubr.msk.f32.mxu0 %vm561_vm0, %v313_v9  ;;  %v345_v9 = vld [vmem:[%s4447_s11 + $0x1c0] sm:$0xff] }
  0x51   : > { %3650 = vmatmul.mubr.msk.f32.gmra.mrb[24].mxu1 %vm561_vm0, %v442_v10  ;;  %v474_v10 = vld [vmem:[%s4442_s7 + $0x1c8] sm:$0xff] }
  0x52   : > { %3858 = vmatmul.mubr.msk.f32.gmra.mrb[24].mxu0 %vm561_vm0, %v314_v11  ;;  %3652 = vmatprep.mubr.msk.f32.mxu1 %vm561_vm0, %v443_v12  ;;  %v346_v11 = vld [vmem:[%s4447_s11 + $0x1c8] sm:$0xff]  ;;  %v475_v12 = vld [vmem:[%s4442_s7 + $0x1d0] sm:$0xff] }
  0x53   : > { %3860 = vmatprep.mubr.msk.f32.mxu0 %vm561_vm0, %v315_v13  ;;  %v347_v13 = vld [vmem:[%s4447_s11 + $0x1d0] sm:$0xff] }
  0x55   : > { %3653 = vmatmul.mubr.msk.f32.gmra.mrb[26].mxu1 %vm561_vm0, %v444_v14  ;;  %v476_v14 = vld [vmem:[%s4442_s7 + $0x1d8] sm:$0xff] }
  0x56   : > { %3861 = vmatmul.mubr.msk.f32.gmra.mrb[26].mxu0 %vm561_vm0, %v316_v15  ;;  %3655 = vmatprep.mubr.msk.f32.mxu1 %vm561_vm0, %v445_v16  ;;  %v348_v15 = vld [vmem:[%s4447_s11 + $0x1d8] sm:$0xff]  ;;  %v477_v16 = vld [vmem:[%s4442_s7 + $0x1e0] sm:$0xff] }
  0x57   : > { %3863 = vmatprep.mubr.msk.f32.mxu0 %vm561_vm0, %v317_v17  ;;  %v349_v17 = vld [vmem:[%s4447_s11 + $0x1e0] sm:$0xff] }
  0x59   : > { %3656 = vmatmul.mubr.msk.f32.gmra.mrb[28].mxu1 %vm561_vm0, %v446_v18  ;;  %v478_v18 = vld [vmem:[%s4442_s7 + $0x1e8] sm:$0xff] }
  0x5a   : > { %3864 = vmatmul.mubr.msk.f32.gmra.mrb[28].mxu0 %vm561_vm0, %v318_v19  ;;  %3658 = vmatprep.mubr.msk.f32.mxu1 %vm561_vm0, %v447_v20  ;;  %v350_v19 = vld [vmem:[%s4447_s11 + $0x1e8] sm:$0xff]  ;;  %v479_v20 = vld [vmem:[%s4442_s7 + $0x1f0] sm:$0xff] }
  0x5b   : > { %3866 = vmatprep.mubr.msk.f32.mxu0 %vm561_vm0, %v319_v21  ;;  %v351_v21 = vld [vmem:[%s4447_s11 + $0x1f0] sm:$0xff] }
  0x5d   : > { %3659 = vmatmul.mubr.msk.f32.gmra.mrb[30].mxu1 %vm561_vm0, %v448_v22  ;;  %v480_v22 = vld [vmem:[%s4442_s7 + $0x1f8] sm:$0xff] }
  0x5e   : > { %3867 = vmatmul.mubr.msk.f32.gmra.mrb[30].mxu0 %vm561_vm0, %v320_v23  ;;  %3661 = vmatprep.mubr.msk.f32.mxu1 %vm561_vm0, %v449_v24  ;;  %v352_v23 = vld [vmem:[%s4447_s11 + $0x1f8] sm:$0xff]  ;;  %v481_v24 = vld [vmem:[%s4442_s7 + $0x200] sm:$0xff] }
  0x5f   : > { %3869 = vmatprep.mubr.msk.f32.mxu0 %vm561_vm0, %v321_v25  ;;  %v353_v25 = vld [vmem:[%s4447_s11 + $0x200] sm:$0xff] }
  0x61   : > { %3662 = vmatmul.mubr.msk.f32.gmra.mrb[32].mxu1 %vm561_vm0, %v450_v26  ;;  %v482_v26 = vld [vmem:[%s4442_s7 + $0x208] sm:$0xff] }
  0x62   : > { %3870 = vmatmul.mubr.msk.f32.gmra.mrb[32].mxu0 %vm561_vm0, %v322_v27  ;;  %3664 = vmatprep.mubr.msk.f32.mxu1 %vm561_vm0, %v451_v28  ;;  %v354_v27 = vld [vmem:[%s4447_s11 + $0x208] sm:$0xff]  ;;  %v483_v28 = vld [vmem:[%s4442_s7 + $0x210] sm:$0xff] }
  0x63   : > { %3872 = vmatprep.mubr.msk.f32.mxu0 %vm561_vm0, %v323_v29  ;;  %v355_v29 = vld [vmem:[%s4447_s11 + $0x210] sm:$0xff] }
  0x65   : > { %3665 = vmatmul.mubr.msk.f32.gmra.mrb[34].mxu1 %vm561_vm0, %v452_v30  ;;  %v484_v30 = vld [vmem:[%s4442_s7 + $0x218] sm:$0xff] }
  0x66   : > { %3873 = vmatmul.mubr.msk.f32.gmra.mrb[34].mxu0 %vm561_vm0, %v324_v31  ;;  %3667 = vmatprep.mubr.msk.f32.mxu1 %vm561_vm0, %v453_v32  ;;  %v356_v31 = vld [vmem:[%s4447_s11 + $0x218] sm:$0xff]  ;;  %v485_v32 = vld [vmem:[%s4442_s7 + $0x220] sm:$0xff] }
  0x67   : > { %3875 = vmatprep.mubr.msk.f32.mxu0 %vm561_vm0, %v325_v33  ;;  %v357_v33 = vld [vmem:[%s4447_s11 + $0x220] sm:$0xff] }
  0x69   : > { %3668 = vmatmul.mubr.msk.f32.gmra.mrb[36].mxu1 %vm561_vm0, %v454_v34  ;;  %v486_v34 = vld [vmem:[%s4442_s7 + $0x228] sm:$0xff] }
  0x6a   : > { %3876 = vmatmul.mubr.msk.f32.gmra.mrb[36].mxu0 %vm561_vm0, %v326_v35  ;;  %3670 = vmatprep.mubr.msk.f32.mxu1 %vm561_vm0, %v455_v36  ;;  %v358_v35 = vld [vmem:[%s4447_s11 + $0x228] sm:$0xff]  ;;  %v487_v36 = vld [vmem:[%s4442_s7 + $0x230] sm:$0xff] }
  0x6b   : > { %3878 = vmatprep.mubr.msk.f32.mxu0 %vm561_vm0, %v327_v37  ;;  %v359_v37 = vld [vmem:[%s4447_s11 + $0x230] sm:$0xff] }
  0x6d   : > { %3671 = vmatmul.mubr.msk.f32.gmra.mrb[38].mxu1 %vm561_vm0, %v456_v38  ;;  %v488_v38 = vld [vmem:[%s4442_s7 + $0x238] sm:$0xff] }
  0x6e   : > { %3879 = vmatmul.mubr.msk.f32.gmra.mrb[38].mxu0 %vm561_vm0, %v328_v39  ;;  %3673 = vmatprep.mubr.msk.f32.mxu1 %vm561_vm0, %v457_v40  ;;  %v360_v39 = vld [vmem:[%s4447_s11 + $0x238] sm:$0xff]  ;;  %v489_v40 = vld [vmem:[%s4442_s7 + $0x240] sm:$0xff] }
  0x6f   : > { %3881 = vmatprep.mubr.msk.f32.mxu0 %vm561_vm0, %v329_v41  ;;  %v361_v41 = vld [vmem:[%s4447_s11 + $0x240] sm:$0xff] }
  0x71   : > { %3674 = vmatmul.mubr.msk.f32.gmra.mrb[40].mxu1 %vm561_vm0, %v458_v42  ;;  %v490_v42 = vld [vmem:[%s4442_s7 + $0x248] sm:$0xff] }
  0x72   : > { %3882 = vmatmul.mubr.msk.f32.gmra.mrb[40].mxu0 %vm561_vm0, %v330_v43  ;;  %3676 = vmatprep.mubr.msk.f32.mxu1 %vm561_vm0, %v459_v44  ;;  %v362_v43 = vld [vmem:[%s4447_s11 + $0x248] sm:$0xff]  ;;  %v491_v44 = vld [vmem:[%s4442_s7 + $0x250] sm:$0xff] }
  0x73   : > { %3884 = vmatprep.mubr.msk.f32.mxu0 %vm561_vm0, %v331_v45  ;;  %v363_v45 = vld [vmem:[%s4447_s11 + $0x250] sm:$0xff] }
  0x75   : > { %3677 = vmatmul.mubr.msk.f32.gmra.mrb[42].mxu1 %vm561_vm0, %v460_v46  ;;  %v492_v46 = vld [vmem:[%s4442_s7 + $0x258] sm:$0xff] }
  0x76   : > { %3885 = vmatmul.mubr.msk.f32.gmra.mrb[42].mxu0 %vm561_vm0, %v332_v47  ;;  %3679 = vmatprep.mubr.msk.f32.mxu1 %vm561_vm0, %v461_v48  ;;  %v364_v47 = vld [vmem:[%s4447_s11 + $0x258] sm:$0xff]  ;;  %v493_v48 = vld [vmem:[%s4442_s7 + $0x260] sm:$0xff] }
  0x77   : > { %3887 = vmatprep.mubr.msk.f32.mxu0 %vm561_vm0, %v333_v49  ;;  %v365_v49 = vld [vmem:[%s4447_s11 + $0x260] sm:$0xff] }
  0x79   : > { %3680 = vmatmul.mubr.msk.f32.gmra.mrb[44].mxu1 %vm561_vm0, %v462_v50  ;;  %v494_v50 = vld [vmem:[%s4442_s7 + $0x268] sm:$0xff] }
  0x7a   : > { %3888 = vmatmul.mubr.msk.f32.gmra.mrb[44].mxu0 %vm561_vm0, %v334_v51  ;;  %3682 = vmatprep.mubr.msk.f32.mxu1 %vm561_vm0, %v463_v52  ;;  %v366_v51 = vld [vmem:[%s4447_s11 + $0x268] sm:$0xff]  ;;  %v495_v52 = vld [vmem:[%s4442_s7 + $0x270] sm:$0xff] }
  0x7b   : > { %3890 = vmatprep.mubr.msk.f32.mxu0 %vm561_vm0, %v335_v53  ;;  %v367_v53 = vld [vmem:[%s4447_s11 + $0x270] sm:$0xff] }
  0x7d   : > { %3683 = vmatmul.mubr.msk.f32.gmra.mrb[46].mxu1 %vm561_vm0, %v464_v54  ;;  %v496_v54 = vld [vmem:[%s4442_s7 + $0x278] sm:$0xff] }
  0x7e   : > { %3891 = vmatmul.mubr.msk.f32.gmra.mrb[46].mxu0 %vm561_vm0, %v336_v55  ;;  %3685 = vmatprep.mubr.msk.f32.mxu1 %vm561_vm0, %v465_v56  ;;  %v368_v55 = vld [vmem:[%s4447_s11 + $0x278] sm:$0xff]  ;;  %v497_v56 = vld [vmem:[%s4442_s7 + $0x280] sm:$0xff] }
  0x7f   : > { %3893 = vmatprep.mubr.msk.f32.mxu0 %vm561_vm0, %v337_v57  ;;  %v369_v57 = vld [vmem:[%s4447_s11 + $0x280] sm:$0xff] }
  0x81   : > { %3686 = vmatmul.mubr.msk.f32.gmra.mrb[48].mxu1 %vm561_vm0, %v466_v58  ;;  %v498_v58 = vld [vmem:[%s4442_s7 + $0x288] sm:$0xff] }
  0x82   : > { %3894 = vmatmul.mubr.msk.f32.gmra.mrb[48].mxu0 %vm561_vm0, %v338_v59  ;;  %3688 = vmatprep.mubr.msk.f32.mxu1 %vm561_vm0, %v467_v60  ;;  %v370_v59 = vld [vmem:[%s4447_s11 + $0x288] sm:$0xff]  ;;  %v499_v60 = vld [vmem:[%s4442_s7 + $0x290] sm:$0xff] }
  0x83   : > { %3896 = vmatprep.mubr.msk.f32.mxu0 %vm561_vm0, %v339_v61  ;;  %v371_v61 = vld [vmem:[%s4447_s11 + $0x290] sm:$0xff] }
  0x85   : > { %3689 = vmatmul.mubr.msk.f32.gmra.mrb[50].mxu1 %vm561_vm0, %v468_v62  ;;  %v500_v62 = vld [vmem:[%s4442_s7 + $0x298] sm:$0xff] }
  0x86   : > { %3897 = vmatmul.mubr.msk.f32.gmra.mrb[50].mxu0 %vm561_vm0, %v340_v63  ;;  %3691 = vmatprep.mubr.msk.f32.mxu1 %vm561_vm0, %v469_v0  ;;  %v372_v63 = vld [vmem:[%s4447_s11 + $0x298] sm:$0xff]  ;;  %v501_v0 = vld [vmem:[%s4442_s7 + $0x2a0] sm:$0xff] }
  0x87   : > { %3899 = vmatprep.mubr.msk.f32.mxu0 %vm561_vm0, %v341_v1  ;;  %v373_v1 = vld [vmem:[%s4447_s11 + $0x2a0] sm:$0xff] }
  0x89   : > { %3692 = vmatmul.mubr.msk.f32.gmra.mrb[52].mxu1 %vm561_vm0, %v470_v2  ;;  %v502_v2 = vld [vmem:[%s4442_s7 + $0x2a8] sm:$0xff] }
  0x8a   : > { %3900 = vmatmul.mubr.msk.f32.gmra.mrb[52].mxu0 %vm561_vm0, %v342_v3  ;;  %3694 = vmatprep.mubr.msk.f32.mxu1 %vm561_vm0, %v471_v4  ;;  %v374_v3 = vld [vmem:[%s4447_s11 + $0x2a8] sm:$0xff]  ;;  %v503_v4 = vld [vmem:[%s4442_s7 + $0x2b0] sm:$0xff] }
  0x8b   : > { %3902 = vmatprep.mubr.msk.f32.mxu0 %vm561_vm0, %v343_v5  ;;  %v375_v5 = vld [vmem:[%s4447_s11 + $0x2b0] sm:$0xff] }
  0x8d   : > { %3695 = vmatmul.mubr.msk.f32.gmra.mrb[54].mxu1 %vm561_vm0, %v472_v6  ;;  %v504_v6 = vld [vmem:[%s4442_s7 + $0x2b8] sm:$0xff] }
  0x8e   : > { %3903 = vmatmul.mubr.msk.f32.gmra.mrb[54].mxu0 %vm561_vm0, %v344_v7  ;;  %3697 = vmatprep.mubr.msk.f32.mxu1 %vm561_vm0, %v473_v8  ;;  %v376_v7 = vld [vmem:[%s4447_s11 + $0x2b8] sm:$0xff]  ;;  %v505_v8 = vld [vmem:[%s4442_s7 + $0x2c0] sm:$0xff] }
  0x8f   : > { %3905 = vmatprep.mubr.msk.f32.mxu0 %vm561_vm0, %v345_v9  ;;  %v377_v9 = vld [vmem:[%s4447_s11 + $0x2c0] sm:$0xff] }
  0x91   : > { %3698 = vmatmul.mubr.msk.f32.gmra.mrb[56].mxu1 %vm561_vm0, %v474_v10  ;;  %v506_v10 = vld [vmem:[%s4442_s7 + $0x2c8] sm:$0xff] }
  0x92   : > { %3906 = vmatmul.mubr.msk.f32.gmra.mrb[56].mxu0 %vm561_vm0, %v346_v11  ;;  %3700 = vmatprep.mubr.msk.f32.mxu1 %vm561_vm0, %v475_v12  ;;  %v378_v11 = vld [vmem:[%s4447_s11 + $0x2c8] sm:$0xff]  ;;  %v507_v12 = vld [vmem:[%s4442_s7 + $0x2d0] sm:$0xff] }
  0x93   : > { %3908 = vmatprep.mubr.msk.f32.mxu0 %vm561_vm0, %v347_v13  ;;  %v379_v13 = vld [vmem:[%s4447_s11 + $0x2d0] sm:$0xff] }
  0x95   : > { %3701 = vmatmul.mubr.msk.f32.gmra.mrb[58].mxu1 %vm561_vm0, %v476_v14  ;;  %v508_v14 = vld [vmem:[%s4442_s7 + $0x2d8] sm:$0xff] }
  0x96   : > { %3909 = vmatmul.mubr.msk.f32.gmra.mrb[58].mxu0 %vm561_vm0, %v348_v15  ;;  %3703 = vmatprep.mubr.msk.f32.mxu1 %vm561_vm0, %v477_v16  ;;  %v380_v15 = vld [vmem:[%s4447_s11 + $0x2d8] sm:$0xff]  ;;  %v509_v16 = vld [vmem:[%s4442_s7 + $0x2e0] sm:$0xff] }
  0x97   : > { %3911 = vmatprep.mubr.msk.f32.mxu0 %vm561_vm0, %v349_v17  ;;  %v381_v17 = vld [vmem:[%s4447_s11 + $0x2e0] sm:$0xff] }
  0x99   : > { %3704 = vmatmul.mubr.msk.f32.gmra.mrb[60].mxu1 %vm561_vm0, %v478_v18  ;;  %v510_v18 = vld [vmem:[%s4442_s7 + $0x2e8] sm:$0xff] }
  0x9a   : > { %3912 = vmatmul.mubr.msk.f32.gmra.mrb[60].mxu0 %vm561_vm0, %v350_v19  ;;  %3706 = vmatprep.mubr.msk.f32.mxu1 %vm561_vm0, %v479_v20  ;;  %v382_v19 = vld [vmem:[%s4447_s11 + $0x2e8] sm:$0xff]  ;;  %v511_v20 = vld [vmem:[%s4442_s7 + $0x2f0] sm:$0xff] }
  0x9b   : > { %3914 = vmatprep.mubr.msk.f32.mxu0 %vm561_vm0, %v351_v21  ;;  %v383_v21 = vld [vmem:[%s4447_s11 + $0x2f0] sm:$0xff] }
  0x9d   : > { %3707 = vmatmul.mubr.msk.f32.gmra.mrb[62].mxu1 %vm561_vm0, %v480_v22  ;;  %v512_v22 = vld [vmem:[%s4442_s7 + $0x2f8] sm:$0xff] }
  0x9e   : > { %3915 = vmatmul.mubr.msk.f32.gmra.mrb[62].mxu0 %vm561_vm0, %v352_v23  ;;  %3709 = vmatprep.mubr.msk.f32.mxu1 %vm561_vm0, %v481_v24  ;;  %v384_v23 = vld [vmem:[%s4447_s11 + $0x2f8] sm:$0xff]  ;;  %v513_v24 = vld [vmem:[%s4442_s7 + $0x300] sm:$0xff] }
  0x9f   : > { %3917 = vmatprep.mubr.msk.f32.mxu0 %vm561_vm0, %v353_v25  ;;  %v385_v25 = vld [vmem:[%s4447_s11 + $0x300] sm:$0xff] }
  0xa1   : > { %3710 = vmatmul.mubr.msk.f32.gmra.mrb[64].mxu1 %vm561_vm0, %v482_v26  ;;  %v514_v26 = vld [vmem:[%s4442_s7 + $0x308] sm:$0xff] }
  0xa2   : > { %3918 = vmatmul.mubr.msk.f32.gmra.mrb[64].mxu0 %vm561_vm0, %v354_v27  ;;  %3712 = vmatprep.mubr.msk.f32.mxu1 %vm561_vm0, %v483_v28  ;;  %v386_v27 = vld [vmem:[%s4447_s11 + $0x308] sm:$0xff]  ;;  %v515_v28 = vld [vmem:[%s4442_s7 + $0x310] sm:$0xff] }
  0xa3   : > { %3920 = vmatprep.mubr.msk.f32.mxu0 %vm561_vm0, %v355_v29  ;;  %v387_v29 = vld [vmem:[%s4447_s11 + $0x310] sm:$0xff] }
  0xa5   : > { %3713 = vmatmul.mubr.msk.f32.gmra.mrb[66].mxu1 %vm561_vm0, %v484_v30  ;;  %v516_v30 = vld [vmem:[%s4442_s7 + $0x318] sm:$0xff] }
  0xa6   : > { %3921 = vmatmul.mubr.msk.f32.gmra.mrb[66].mxu0 %vm561_vm0, %v356_v31  ;;  %3715 = vmatprep.mubr.msk.f32.mxu1 %vm561_vm0, %v485_v32  ;;  %v388_v31 = vld [vmem:[%s4447_s11 + $0x318] sm:$0xff]  ;;  %v517_v32 = vld [vmem:[%s4442_s7 + $0x320] sm:$0xff] }
  0xa7   : > { %3923 = vmatprep.mubr.msk.f32.mxu0 %vm561_vm0, %v357_v33  ;;  %v389_v33 = vld [vmem:[%s4447_s11 + $0x320] sm:$0xff] }
  0xa9   : > { %3716 = vmatmul.mubr.msk.f32.gmra.mrb[68].mxu1 %vm561_vm0, %v486_v34  ;;  %v518_v34 = vld [vmem:[%s4442_s7 + $0x328] sm:$0xff] }
  0xaa   : > { %3924 = vmatmul.mubr.msk.f32.gmra.mrb[68].mxu0 %vm561_vm0, %v358_v35  ;;  %3718 = vmatprep.mubr.msk.f32.mxu1 %vm561_vm0, %v487_v36  ;;  %v390_v35 = vld [vmem:[%s4447_s11 + $0x328] sm:$0xff]  ;;  %v519_v36 = vld [vmem:[%s4442_s7 + $0x330] sm:$0xff] }
  0xab   : > { %3926 = vmatprep.mubr.msk.f32.mxu0 %vm561_vm0, %v359_v37  ;;  %v391_v37 = vld [vmem:[%s4447_s11 + $0x330] sm:$0xff] }
  0xad   : > { %3719 = vmatmul.mubr.msk.f32.gmra.mrb[70].mxu1 %vm561_vm0, %v488_v38  ;;  %v520_v38 = vld [vmem:[%s4442_s7 + $0x338] sm:$0xff] }
  0xae   : > { %3927 = vmatmul.mubr.msk.f32.gmra.mrb[70].mxu0 %vm561_vm0, %v360_v39  ;;  %3721 = vmatprep.mubr.msk.f32.mxu1 %vm561_vm0, %v489_v40  ;;  %v392_v39 = vld [vmem:[%s4447_s11 + $0x338] sm:$0xff]  ;;  %v521_v40 = vld [vmem:[%s4442_s7 + $0x340] sm:$0xff] }
  0xaf   : > { %3929 = vmatprep.mubr.msk.f32.mxu0 %vm561_vm0, %v361_v41  ;;  %v393_v41 = vld [vmem:[%s4447_s11 + $0x340] sm:$0xff] }
  0xb1   : > { %3722 = vmatmul.mubr.msk.f32.gmra.mrb[72].mxu1 %vm561_vm0, %v490_v42  ;;  %v522_v42 = vld [vmem:[%s4442_s7 + $0x348] sm:$0xff] }
  0xb2   : > { %3930 = vmatmul.mubr.msk.f32.gmra.mrb[72].mxu0 %vm561_vm0, %v362_v43  ;;  %3724 = vmatprep.mubr.msk.f32.mxu1 %vm561_vm0, %v491_v44  ;;  %v394_v43 = vld [vmem:[%s4447_s11 + $0x348] sm:$0xff]  ;;  %v523_v44 = vld [vmem:[%s4442_s7 + $0x350] sm:$0xff] }
  0xb3   : > { %3932 = vmatprep.mubr.msk.f32.mxu0 %vm561_vm0, %v363_v45  ;;  %v395_v45 = vld [vmem:[%s4447_s11 + $0x350] sm:$0xff] }
  0xb5   : > { %3725 = vmatmul.mubr.msk.f32.gmra.mrb[74].mxu1 %vm561_vm0, %v492_v46  ;;  %v524_v46 = vld [vmem:[%s4442_s7 + $0x358] sm:$0xff] }
  0xb6   : > { %3933 = vmatmul.mubr.msk.f32.gmra.mrb[74].mxu0 %vm561_vm0, %v364_v47  ;;  %3727 = vmatprep.mubr.msk.f32.mxu1 %vm561_vm0, %v493_v48  ;;  %v396_v47 = vld [vmem:[%s4447_s11 + $0x358] sm:$0xff]  ;;  %v525_v48 = vld [vmem:[%s4442_s7 + $0x360] sm:$0xff] }
  0xb7   : > { %3935 = vmatprep.mubr.msk.f32.mxu0 %vm561_vm0, %v365_v49 }
  0xb9   : > { %3728 = vmatmul.mubr.msk.f32.gmra.mrb[76].mxu1 %vm561_vm0, %v494_v50  ;;  %v397_v50 = vld [vmem:[%s4447_s11 + $0x360] sm:$0xff] }
  0xba   : > { %3936 = vmatmul.mubr.msk.f32.gmra.mrb[76].mxu0 %vm561_vm0, %v366_v51  ;;  %3730 = vmatprep.mubr.msk.f32.mxu1 %vm561_vm0, %v495_v52 }
  0xbb   : > { %3938 = vmatprep.mubr.msk.f32.mxu0 %vm561_vm0, %v367_v53 }
  0xbd   : > { %3731 = vmatmul.mubr.msk.f32.gmra.mrb[78].mxu1 %vm561_vm0, %v496_v54 }
  0xbe   : > { %3939 = vmatmul.mubr.msk.f32.gmra.mrb[78].mxu0 %vm561_vm0, %v368_v55  ;;  %3733 = vmatprep.mubr.msk.f32.mxu1 %vm561_vm0, %v497_v56  ;;  %v526_v55 = vld [vmem:[%s4442_s7 + $0x368] sm:$0xff] }
  0xbf   : > { %3941 = vmatprep.mubr.msk.f32.mxu0 %vm561_vm0, %v369_v57  ;;  %v398_v57 = vld [vmem:[%s4447_s11 + $0x368] sm:$0xff] }
  0xc1   : > { %3734 = vmatmul.mubr.msk.f32.gmra.mrb[80].mxu1 %vm561_vm0, %v498_v58  ;;  %v527_v58 = vld [vmem:[%s4442_s7 + $0x370] sm:$0xff] }
  0xc2   : > { %3942 = vmatmul.mubr.msk.f32.gmra.mrb[80].mxu0 %vm561_vm0, %v370_v59  ;;  %3736 = vmatprep.mubr.msk.f32.mxu1 %vm561_vm0, %v499_v60  ;;  %v399_v60 = vld [vmem:[%s4447_s11 + $0x370] sm:$0xff] }
  0xc3   : > { %3944 = vmatprep.mubr.msk.f32.mxu0 %vm561_vm0, %v371_v61 }
  0xc5   : > { %3737 = vmatmul.mubr.msk.f32.gmra.mrb[82].mxu1 %vm561_vm0, %v500_v62 }
  0xc6   : > { %3945 = vmatmul.mubr.msk.f32.gmra.mrb[82].mxu0 %vm561_vm0, %v372_v63  ;;  %3739 = vmatprep.mubr.msk.f32.mxu1 %vm561_vm0, %v501_v0 }
  0xc7   : > { %3947 = vmatprep.mubr.msk.f32.mxu0 %vm561_vm0, %v373_v1  ;;  %v528_v1 = vld [vmem:[%s4442_s7 + $0x378] sm:$0xff] }
  0xc9   : > { %3740 = vmatmul.mubr.msk.f32.gmra.mrb[84].mxu1 %vm561_vm0, %v502_v2 }
  0xca   : > { %3948 = vmatmul.mubr.msk.f32.gmra.mrb[84].mxu0 %vm561_vm0, %v374_v3  ;;  %3742 = vmatprep.mubr.msk.f32.mxu1 %vm561_vm0, %v503_v4  ;;  %v400_v3 = vld [vmem:[%s4447_s11 + $0x378] sm:$0xff]  ;;  %v529_v4 = vld [vmem:[%s4442_s7 + $0x380] sm:$0xff] }
  0xcb   : > { %3950 = vmatprep.mubr.msk.f32.mxu0 %vm561_vm0, %v375_v5 }
  0xcd   : > { %3743 = vmatmul.mubr.msk.f32.gmra.mrb[86].mxu1 %vm561_vm0, %v504_v6  ;;  %v401_v6 = vld [vmem:[%s4447_s11 + $0x380] sm:$0xff] }
  0xce   : > { %3951 = vmatmul.mubr.msk.f32.gmra.mrb[86].mxu0 %vm561_vm0, %v376_v7  ;;  %3745 = vmatprep.mubr.msk.f32.mxu1 %vm561_vm0, %v505_v8 }
  0xcf   : > { %3953 = vmatprep.mubr.msk.f32.mxu0 %vm561_vm0, %v377_v9 }
  0xd1   : > { %3746 = vmatmul.mubr.msk.f32.gmra.mrb[88].mxu1 %vm561_vm0, %v506_v10 }
  0xd2   : > { %3954 = vmatmul.mubr.msk.f32.gmra.mrb[88].mxu0 %vm561_vm0, %v378_v11  ;;  %3748 = vmatprep.mubr.msk.f32.mxu1 %vm561_vm0, %v507_v12  ;;  %v530_v11 = vld [vmem:[%s4442_s7 + $0x388] sm:$0xff] }
  0xd3   : > { %3956 = vmatprep.mubr.msk.f32.mxu0 %vm561_vm0, %v379_v13  ;;  %v402_v13 = vld [vmem:[%s4447_s11 + $0x388] sm:$0xff] }
  0xd5   : > { %3749 = vmatmul.mubr.msk.f32.gmra.mrb[90].mxu1 %vm561_vm0, %v508_v14  ;;  %v531_v14 = vld [vmem:[%s4442_s7 + $0x390] sm:$0xff] }
  0xd6   : > { %3957 = vmatmul.mubr.msk.f32.gmra.mrb[90].mxu0 %vm561_vm0, %v380_v15  ;;  %3751 = vmatprep.mubr.msk.f32.mxu1 %vm561_vm0, %v509_v16  ;;  %v403_v16 = vld [vmem:[%s4447_s11 + $0x390] sm:$0xff] }
  0xd7   : > { %3959 = vmatprep.mubr.msk.f32.mxu0 %vm561_vm0, %v381_v17 }
  0xd9   : > { %3752 = vmatmul.mubr.msk.f32.gmra.mrb[92].mxu1 %vm561_vm0, %v510_v18 }
  0xda   : > { %3960 = vmatmul.mubr.msk.f32.gmra.mrb[92].mxu0 %vm561_vm0, %v382_v19  ;;  %3754 = vmatprep.mubr.msk.f32.mxu1 %vm561_vm0, %v511_v20 }
  0xdb   : > { %3962 = vmatprep.mubr.msk.f32.mxu0 %vm561_vm0, %v383_v21  ;;  %v532_v21 = vld [vmem:[%s4442_s7 + $0x398] sm:$0xff] }
  0xdd   : > { %3755 = vmatmul.mubr.msk.f32.gmra.mrb[94].mxu1 %vm561_vm0, %v512_v22 }
  0xde   : > { %3963 = vmatmul.mubr.msk.f32.gmra.mrb[94].mxu0 %vm561_vm0, %v384_v23  ;;  %3757 = vmatprep.mubr.msk.f32.mxu1 %vm561_vm0, %v513_v24  ;;  %v404_v23 = vld [vmem:[%s4447_s11 + $0x398] sm:$0xff]  ;;  %v533_v24 = vld [vmem:[%s4442_s7 + $0x3a0] sm:$0xff] }
  0xdf   : > { %3965 = vmatprep.mubr.msk.f32.mxu0 %vm561_vm0, %v385_v25 }
  0xe1   : > { %3758 = vmatmul.mubr.msk.f32.gmra.mrb[96].mxu1 %vm561_vm0, %v514_v26  ;;  %v405_v26 = vld [vmem:[%s4447_s11 + $0x3a0] sm:$0xff] }
  0xe2   : > { %3966 = vmatmul.mubr.msk.f32.gmra.mrb[96].mxu0 %vm561_vm0, %v386_v27  ;;  %3760 = vmatprep.mubr.msk.f32.mxu1 %vm561_vm0, %v515_v28 }
  0xe3   : > { %3968 = vmatprep.mubr.msk.f32.mxu0 %vm561_vm0, %v387_v29 }
  0xe5   : > { %3761 = vmatmul.mubr.msk.f32.gmra.mrb[98].mxu1 %vm561_vm0, %v516_v30 }
  0xe6   : > { %3969 = vmatmul.mubr.msk.f32.gmra.mrb[98].mxu0 %vm561_vm0, %v388_v31  ;;  %3763 = vmatprep.mubr.msk.f32.mxu1 %vm561_vm0, %v517_v32  ;;  %v534_v31 = vld [vmem:[%s4442_s7 + $0x3a8] sm:$0xff] }
  0xe7   : > { %3971 = vmatprep.mubr.msk.f32.mxu0 %vm561_vm0, %v389_v33  ;;  %v406_v33 = vld [vmem:[%s4447_s11 + $0x3a8] sm:$0xff] }
  0xe9   : > { %3764 = vmatmul.mubr.msk.f32.gmra.mrb[100].mxu1 %vm561_vm0, %v518_v34  ;;  %v535_v34 = vld [vmem:[%s4442_s7 + $0x3b0] sm:$0xff] }
  0xea   : > { %3972 = vmatmul.mubr.msk.f32.gmra.mrb[100].mxu0 %vm561_vm0, %v390_v35  ;;  %3766 = vmatprep.mubr.msk.f32.mxu1 %vm561_vm0, %v519_v36  ;;  %v407_v36 = vld [vmem:[%s4447_s11 + $0x3b0] sm:$0xff] }
  0xeb   : > { %3974 = vmatprep.mubr.msk.f32.mxu0 %vm561_vm0, %v391_v37 }
  0xed   : > { %3767 = vmatmul.mubr.msk.f32.gmra.mrb[102].mxu1 %vm561_vm0, %v520_v38 }
  0xee   : > { %3975 = vmatmul.mubr.msk.f32.gmra.mrb[102].mxu0 %vm561_vm0, %v392_v39  ;;  %3769 = vmatprep.mubr.msk.f32.mxu1 %vm561_vm0, %v521_v40 }
  0xef   : > { %3977 = vmatprep.mubr.msk.f32.mxu0 %vm561_vm0, %v393_v41  ;;  %v536_v41 = vld [vmem:[%s4442_s7 + $0x3b8] sm:$0xff] }
  0xf1   : > { %3770 = vmatmul.mubr.msk.f32.gmra.mrb[104].mxu1 %vm561_vm0, %v522_v42 }
  0xf2   : > { %3978 = vmatmul.mubr.msk.f32.gmra.mrb[104].mxu0 %vm561_vm0, %v394_v43  ;;  %3772 = vmatprep.mubr.msk.f32.mxu1 %vm561_vm0, %v523_v44  ;;  %v408_v43 = vld [vmem:[%s4447_s11 + $0x3b8] sm:$0xff]  ;;  %v537_v44 = vld [vmem:[%s4442_s7 + $0x3c0] sm:$0xff] }
  0xf3   : > { %3980 = vmatprep.mubr.msk.f32.mxu0 %vm561_vm0, %v395_v45 }
  0xf4   : > { %v3615_v49 = vpop.f32.mrb[0].mxu1 }
  0xf5   : > { %v3823_v51 = vpop.f32.mrb[0].mxu0  ;;  %v1012_v52 = vpop.f32.mrb[1].mxu1  ;;  %3773 = vmatmul.mubr.msk.f32.gmra.mrb[106].mxu1 %vm561_vm0, %v524_v46  ;;  %v409_v46 = vld [vmem:[%s4447_s11 + $0x3c0] sm:$0xff] }
  0xf6   : > { %v4891_v53 = vadd.f32 %v3823_v51, %v3615_v49  ;;  %v2101_v54 = vpop.f32.mrb[1].mxu0  ;;  %3981 = vmatmul.mubr.msk.f32.gmra.mrb[106].mxu0 %vm561_vm0, %v396_v47  ;;  %3775 = vmatprep.mubr.msk.f32.mxu1 %vm561_vm0, %v525_v48  ;;  %v538_v51 = vld [vmem:[%s4442_s7 + $0x3c8] sm:$0xff] }
  0xf7   : > { %v4896_v56 = vadd.f32 %v2101_v54, %v1012_v52  ;;  %3983 = vmatprep.mubr.msk.f32.mxu0 %vm561_vm0, %v397_v50  ;;  %v410_v54 = vld [vmem:[%s4447_s11 + $0x3c8] sm:$0xff] }
  0xf8   : > { %v3618_v59 = vpop.f32.mrb[2].mxu1 }
  0xf9   : > { %v3826_v61 = vpop.f32.mrb[2].mxu0  ;;  %v1022_v62 = vpop.f32.mrb[3].mxu1  ;;  %3776 = vmatmul.mubr.msk.f32.gmra.mrb[108].mxu1 %vm561_vm0, %v526_v55  ;;  %v539_v55 = vld [vmem:[%s4442_s7 + $0x3d0] sm:$0xff] }
  0xfa   : > { %v4903_v63 = vadd.f32 %v3826_v61, %v3618_v59  ;;  %v2111_v0 = vpop.f32.mrb[3].mxu0  ;;  %3984 = vmatmul.mubr.msk.f32.gmra.mrb[108].mxu0 %vm561_vm0, %v398_v57  ;;  %3778 = vmatprep.mubr.msk.f32.mxu1 %vm561_vm0, %v527_v58  ;;  %v411_v58 = vld [vmem:[%s4447_s11 + $0x3d0] sm:$0xff] }
  0xfb   : > { %v4908_v2 = vadd.f32 %v2111_v0, %v1022_v62  ;;  %3986 = vmatprep.mubr.msk.f32.mxu0 %vm561_vm0, %v399_v60  ;;  %v540_v0 = vld [vmem:[%s4442_s7 + $0x3d8] sm:$0xff] }
  0xfc   : > { %v3621_v5 = vpop.f32.mrb[4].mxu1 }
  0xfd   : > { %v3829_v7 = vpop.f32.mrb[4].mxu0  ;;  %v1032_v8 = vpop.f32.mrb[5].mxu1  ;;  %3779 = vmatmul.mubr.msk.f32.gmra.mrb[110].mxu1 %vm561_vm0, %v528_v1 }
  0xfe   : > { %v4915_v9 = vadd.f32 %v3829_v7, %v3621_v5  ;;  %v2121_v10 = vpop.f32.mrb[5].mxu0  ;;  %3987 = vmatmul.mubr.msk.f32.gmra.mrb[110].mxu0 %vm561_vm0, %v400_v3  ;;  %3781 = vmatprep.mubr.msk.f32.mxu1 %vm561_vm0, %v529_v4  ;;  %v412_v3 = vld [vmem:[%s4447_s11 + $0x3d8] sm:$0xff]  ;;  %v541_v4 = vld [vmem:[%s4442_s7 + $0x3e0] sm:$0xff] }
  0xff   : > { %v4920_v12 = vadd.f32 %v2121_v10, %v1032_v8  ;;  %3989 = vmatprep.mubr.msk.f32.mxu0 %vm561_vm0, %v401_v6  ;;  %v413_v6 = vld [vmem:[%s4447_s11 + $0x3e0] sm:$0xff] }
 0x100   : > { %v3624_v15 = vpop.f32.mrb[6].mxu1 }
 0x101   : > { %v3832_v17 = vpop.f32.mrb[6].mxu0  ;;  %v1042_v18 = vpop.f32.mrb[7].mxu1  ;;  %3782 = vmatmul.mubr.msk.f32.gmra.mrb[112].mxu1 %vm561_vm0, %v530_v11 }
 0x102   : > { %v4927_v19 = vadd.f32 %v3832_v17, %v3624_v15  ;;  %v2131_v20 = vpop.f32.mrb[7].mxu0  ;;  %3990 = vmatmul.mubr.msk.f32.gmra.mrb[112].mxu0 %vm561_vm0, %v402_v13  ;;  %3784 = vmatprep.mubr.msk.f32.mxu1 %vm561_vm0, %v531_v14  ;;  %v542_v13 = vld [vmem:[%s4442_s7 + $0x3e8] sm:$0xff] }
 0x103   : > { %v4932_v22 = vadd.f32 %v2131_v20, %v1042_v18  ;;  %3992 = vmatprep.mubr.msk.f32.mxu0 %vm561_vm0, %v403_v16  ;;  %v414_v15 = vld [vmem:[%s4447_s11 + $0x3e8] sm:$0xff]  ;;  %v543_v16 = vld [vmem:[%s4442_s7 + $0x3f0] sm:$0xff] }
 0x104   : > { %v3627_v25 = vpop.f32.mrb[8].mxu1  ;;  %v415_v20 = vld [vmem:[%s4447_s11 + $0x3f0] sm:$0xff] }
 0x105   : > { %v3835_v27 = vpop.f32.mrb[8].mxu0  ;;  %v1052_v28 = vpop.f32.mrb[9].mxu1  ;;  %3785 = vmatmul.mubr.msk.f32.gmra.mrb[114].mxu1 %vm561_vm0, %v532_v21 }
 0x106   : > { %v4939_v29 = vadd.f32 %v3835_v27, %v3627_v25  ;;  %v2141_v30 = vpop.f32.mrb[9].mxu0  ;;  %3993 = vmatmul.mubr.msk.f32.gmra.mrb[114].mxu0 %vm561_vm0, %v404_v23  ;;  %3787 = vmatprep.mubr.msk.f32.mxu1 %vm561_vm0, %v533_v24  ;;  %v544_v27 = vld [vmem:[%s4442_s7 + $0x3f8] sm:$0xff]  ;;  %s3324_s7 = sshll.u32 %s4300_s21, 11  ;;  %s4310_s21 = smov [#allocation2]  }
 0x107   : > { %v4944_v32 = vadd.f32 %v2141_v30, %v1052_v28  ;;  %3995 = vmatprep.mubr.msk.f32.mxu0 %vm561_vm0, %v405_v26  ;;  %v416_v30 = vld [vmem:[%s4447_s11 + $0x3f8] sm:$0xff]  ;;  %s5496_s10 = scalar_lea.hbm %s5554_s5, %s3324_s7  ;;  %s4234_s14 = sshll.u32 %s4310_s21, 4  ;;  %s4235_s14 = int_to_ptr.vmem [resolvable:$false] %s4234_s14 }
 0x108   : > { %v3630_v35 = vpop.f32.mrb[10].mxu1  ;;  %s4236_s15 = scalar_lea.vmem %s4235_s14, 4096  ;;  %p4237_p1 = scmp.lt.s32.totalorder %s5498_s8, %s4235_s14 }
 0x109   : > { %v3838_v37 = vpop.f32.mrb[10].mxu0  ;;  %v1062_v38 = vpop.f32.mrb[11].mxu1  ;;  %3788 = vmatmul.mubr.msk.f32.gmra.mrb[116].mxu1 %vm561_vm0, %v534_v31  ;;  %p4238_p2 = scmp.lt.s32.totalorder %s4236_s15, %s4230_s13 }
 0x10a   : > { %v4951_v39 = vadd.f32 %v3838_v37, %v3630_v35  ;;  %v2151_v40 = vpop.f32.mrb[11].mxu0  ;;  %3996 = vmatmul.mubr.msk.f32.gmra.mrb[116].mxu0 %vm561_vm0, %v406_v33  ;;  %3790 = vmatprep.mubr.msk.f32.mxu1 %vm561_vm0, %v535_v34 }
 0x10b   : > { %v4956_v42 = vadd.f32 %v2151_v40, %v1062_v38  ;;  %3998 = vmatprep.mubr.msk.f32.mxu0 %vm561_vm0, %v407_v36  ;;  %p4239_p3 = por %p4238_p2, %p4237_p1 }
 0x10c   : > { %v3633_v45 = vpop.f32.mrb[12].mxu1 }
 0x10d   : > { %v3841_v47 = vpop.f32.mrb[12].mxu0  ;;  %v1072_v48 = vpop.f32.mrb[13].mxu1  ;;  %3791 = vmatmul.mubr.msk.f32.gmra.mrb[118].mxu1 %vm561_vm0, %v536_v41  ;;  %p4240_p5 = pnand %p4239_p3, %p4233_p0 }
 0x10e   : > { %v4963_v49 = vadd.f32 %v3841_v47, %v3633_v45  ;;  %v2161_v50 = vpop.f32.mrb[13].mxu0  ;;  %3999 = vmatmul.mubr.msk.f32.gmra.mrb[118].mxu0 %vm561_vm0, %v408_v43  ;;  %3793 = vmatprep.mubr.msk.f32.mxu1 %vm561_vm0, %v537_v44 }
 0x10f   : > { %v4968_v52 = vadd.f32 %v2161_v50, %v1072_v48  ;;  %4001 = vmatprep.mubr.msk.f32.mxu0 %vm561_vm0, %v409_v46 }
 0x110   : > { %v3636_v57 = vpop.f32.mrb[14].mxu1 }
 0x111   : > { %v3844_v59 = vpop.f32.mrb[14].mxu0  ;;  %v1082_v60 = vpop.f32.mrb[15].mxu1  ;;  %3794 = vmatmul.mubr.msk.f32.gmra.mrb[120].mxu1 %vm561_vm0, %v538_v51 }
 0x112   : > { %v4975_v61 = vadd.f32 %v3844_v59, %v3636_v57  ;;  %v2171_v62 = vpop.f32.mrb[15].mxu0  ;;  %4002 = vmatmul.mubr.msk.f32.gmra.mrb[120].mxu0 %vm561_vm0, %v410_v54  ;;  %3796 = vmatprep.mubr.msk.f32.mxu1 %vm561_vm0, %v539_v55 }
 0x113   : > { %v4980_v1 = vadd.f32 %v2171_v62, %v1082_v60  ;;  %4004 = vmatprep.mubr.msk.f32.mxu0 %vm561_vm0, %v411_v58 }
 0x114   : > { %v3639_v5 = vpop.f32.mrb[16].mxu1 }
 0x115   : > { %v3847_v7 = vpop.f32.mrb[16].mxu0  ;;  %v1092_v8 = vpop.f32.mrb[17].mxu1  ;;  %3797 = vmatmul.mubr.msk.f32.gmra.mrb[122].mxu1 %vm561_vm0, %v540_v0 }
 0x116   : > { %v4987_v10 = vadd.f32 %v3847_v7, %v3639_v5  ;;  %v2181_v11 = vpop.f32.mrb[17].mxu0  ;;  %4005 = vmatmul.mubr.msk.f32.gmra.mrb[122].mxu0 %vm561_vm0, %v412_v3  ;;  %3799 = vmatprep.mubr.msk.f32.mxu1 %vm561_vm0, %v541_v4 }
 0x117   : > { %v4992_v14 = vadd.f32 %v2181_v11, %v1092_v8  ;;  %4007 = vmatprep.mubr.msk.f32.mxu0 %vm561_vm0, %v413_v6 }
 0x118   : > { %v2747_v17 = vmax.f32 %v4891_v53, %v4987_v10  ;;  %v3642_v18 = vpop.f32.mrb[18].mxu1 }
 0x119   : > { %v2740_v21 = vmax.f32 %v4896_v56, %v4992_v14  ;;  %v3850_v23 = vpop.f32.mrb[18].mxu0  ;;  %v1102_v24 = vpop.f32.mrb[19].mxu1  ;;  %3800 = vmatmul.mubr.msk.f32.gmra.mrb[124].mxu1 %vm561_vm0, %v542_v13 }
 0x11a   : > { %v5003_v25 = vadd.f32 %v3850_v23, %v3642_v18  ;;  %v2191_v26 = vpop.f32.mrb[19].mxu0  ;;  %4008 = vmatmul.mubr.msk.f32.gmra.mrb[124].mxu0 %vm561_vm0, %v414_v15  ;;  %3802 = vmatprep.mubr.msk.f32.mxu1 %vm561_vm0, %v543_v16 }
 0x11b   : > { %v5008_v28 = vadd.f32 %v2191_v26, %v1102_v24  ;;  %4010 = vmatprep.mubr.msk.f32.mxu0 %vm561_vm0, %v415_v20 }
 0x11c   : > { %v2761_v31 = vmax.f32 %v4903_v63, %v5003_v25  ;;  %v3645_v33 = vpop.f32.mrb[20].mxu1 }
 0x11d   : > { %v2754_v34 = vmax.f32 %v4908_v2, %v5008_v28  ;;  %v3853_v35 = vpop.f32.mrb[20].mxu0  ;;  %v1112_v36 = vpop.f32.mrb[21].mxu1  ;;  %3803 = vmatmul.mubr.msk.f32.gmra.mrb[126].mxu1 %vm561_vm0, %v544_v27 }
 0x11e   : > { %v5017_v37 = vadd.f32 %v3853_v35, %v3645_v33  ;;  %v2201_v38 = vpop.f32.mrb[21].mxu0  ;;  %4011 = vmatmul.mubr.msk.f32.gmra.mrb[126].mxu0 %vm561_vm0, %v416_v30 }
 0x11f   : > { %v5020_v40 = vadd.f32 %v2201_v38, %v1112_v36 }
 0x120   : > { %v2775_v41 = vmax.f32 %v4915_v9, %v5017_v37  ;;  %v3648_v43 = vpop.f32.mrb[22].mxu1 }
 0x121   : > { %v2768_v44 = vmax.f32 %v4920_v12, %v5020_v40  ;;  %v3856_v45 = vpop.f32.mrb[22].mxu0  ;;  %v1122_v46 = vpop.f32.mrb[23].mxu1 }
 0x122   : > { %v5026_v47 = vadd.f32 %v3856_v45, %v3648_v43  ;;  %v2211_v48 = vpop.f32.mrb[23].mxu0 }
 0x123   : > { %v5028_v50 = vadd.f32 %v2211_v48, %v1122_v46 }
 0x124   : > { %v2789_v51 = vmax.f32 %v4927_v19, %v5026_v47  ;;  %v3651_v54 = vpop.f32.mrb[24].mxu1 }
 0x125   : > { %v2782_v55 = vmax.f32 %v4932_v22, %v5028_v50  ;;  %v3859_v57 = vpop.f32.mrb[24].mxu0  ;;  %v1132_v58 = vpop.f32.mrb[25].mxu1 }
 0x126   : > { %v5034_v59 = vadd.f32 %v3859_v57, %v3651_v54  ;;  %v2221_v60 = vpop.f32.mrb[25].mxu0 }
 0x127   : > { %v5036_v62 = vadd.f32 %v2221_v60, %v1132_v58 }
 0x128   : > { %v2803_v0 = vmax.f32 %v4939_v29, %v5034_v59  ;;  %v3654_v3 = vpop.f32.mrb[26].mxu1 }
 0x129   : > { %v2796_v4 = vmax.f32 %v4944_v32, %v5036_v62  ;;  %v3862_v5 = vpop.f32.mrb[26].mxu0  ;;  %v1142_v6 = vpop.f32.mrb[27].mxu1 }
 0x12a   : > { %v5042_v7 = vadd.f32 %v3862_v5, %v3654_v3  ;;  %v2231_v8 = vpop.f32.mrb[27].mxu0 }
 0x12b   : > { %v5044_v11 = vadd.f32 %v2231_v8, %v1142_v6 }
 0x12c   : > { %v2817_v13 = vmax.f32 %v4951_v39, %v5042_v7  ;;  %v3657_v15 = vpop.f32.mrb[28].mxu1 }
 0x12d   : > { %v2810_v16 = vmax.f32 %v4956_v42, %v5044_v11  ;;  %v3865_v18 = vpop.f32.mrb[28].mxu0  ;;  %v1152_v20 = vpop.f32.mrb[29].mxu1 }
 0x12e   : > { %v5050_v23 = vadd.f32 %v3865_v18, %v3657_v15  ;;  %v2241_v24 = vpop.f32.mrb[29].mxu0 }
 0x12f   : > { %v5052_v26 = vadd.f32 %v2241_v24, %v1152_v20 }
 0x130   : > { %v2831_v27 = vmax.f32 %v4963_v49, %v5050_v23  ;;  %v3660_v30 = vpop.f32.mrb[30].mxu1 }
 0x131   : > { %v2824_v33 = vmax.f32 %v4968_v52, %v5052_v26  ;;  %v3868_v35 = vpop.f32.mrb[30].mxu0  ;;  %v1162_v36 = vpop.f32.mrb[31].mxu1 }
 0x132   : > { %v5058_v38 = vadd.f32 %v3868_v35, %v3660_v30  ;;  %v2251_v43 = vpop.f32.mrb[31].mxu0 }
 0x133   : > { %v5060_v45 = vadd.f32 %v2251_v43, %v1162_v36 }
 0x134   : > { %v2845_v46 = vmax.f32 %v4975_v61, %v5058_v38  ;;  %v3663_v48 = vpop.f32.mrb[32].mxu1 }
 0x135   : > { %v2838_v54 = vmax.f32 %v4980_v1, %v5060_v45  ;;  %v3871_v57 = vpop.f32.mrb[32].mxu0  ;;  %v1172_v58 = vpop.f32.mrb[33].mxu1 }
 0x136   : > { %v2267_v60 = vadd.f32 %v3871_v57, %v3663_v48  ;;  %v2261_v3 = vpop.f32.mrb[33].mxu0 }
 0x137   : > { %v2262_v5 = vadd.f32 %v2261_v3, %v1172_v58 }
 0x138   : > { %v5069_v6 = vmax.f32 %v2747_v17, %v2267_v60  ;;  %v3666_v8 = vpop.f32.mrb[34].mxu1 }
 0x139   : > { %v5074_v15 = vmax.f32 %v2740_v21, %v2262_v5  ;;  %v3874_v18 = vpop.f32.mrb[34].mxu0  ;;  %v1182_v20 = vpop.f32.mrb[35].mxu1 }
 0x13a   : > { %v2277_v24 = vadd.f32 %v3874_v18, %v3666_v8  ;;  %v2271_v30 = vpop.f32.mrb[35].mxu0 }
 0x13b   : > { %v2272_v35 = vadd.f32 %v2271_v30, %v1182_v20 }
 0x13c   : > { %v5079_v36 = vmax.f32 %v2761_v31, %v2277_v24  ;;  %v3669_v43 = vpop.f32.mrb[36].mxu1 }
 0x13d   : > { %v5084_v53 = vmax.f32 %v2754_v34, %v2272_v35  ;;  %v3877_v10 = vpop.f32.mrb[36].mxu0  ;;  %v1192_v56 = vpop.f32.mrb[37].mxu1 }
 0x13e   : > { %v2287_v14 = vadd.f32 %v3877_v10, %v3669_v43  ;;  %v2281_v17 = vpop.f32.mrb[37].mxu0 }
 0x13f   : > { %v2282_v21 = vadd.f32 %v2281_v17, %v1192_v56 }
 0x140   : > { %v5089_v48 = vmax.f32 %v2775_v41, %v2287_v14  ;;  %v3672_v57 = vpop.f32.mrb[38].mxu1 }
 0x141   : > { %v5094_v63 = vmax.f32 %v2768_v44, %v2282_v21  ;;  %v3880_v25 = vpop.f32.mrb[38].mxu0  ;;  %v1202_v2 = vpop.f32.mrb[39].mxu1 }
 0x142   : > { %v2297_v28 = vadd.f32 %v3880_v25, %v3672_v57  ;;  %v2291_v31 = vpop.f32.mrb[39].mxu0 }
 0x143   : > { %v2292_v34 = vadd.f32 %v2291_v31, %v1202_v2 }
 0x144   : > { %v5099_v58 = vmax.f32 %v2789_v51, %v2297_v28  ;;  %v3675_v60 = vpop.f32.mrb[40].mxu1 }
 0x145   : > { %v5104_v9 = vmax.f32 %v2782_v55, %v2292_v34  ;;  %v3883_v37 = vpop.f32.mrb[40].mxu0  ;;  %v1212_v12 = vpop.f32.mrb[41].mxu1 }
 0x146   : > { %v2307_v40 = vadd.f32 %v3883_v37, %v3675_v60  ;;  %v2301_v41 = vpop.f32.mrb[41].mxu0 }
 0x147   : > { %v2302_v44 = vadd.f32 %v2301_v41, %v1212_v12 }
 0x148   : > { %v5109_v3 = vmax.f32 %v2803_v0, %v2307_v40  ;;  %v3678_v5 = vpop.f32.mrb[42].mxu1 }
 0x149   : > { %v5114_v19 = vmax.f32 %v2796_v4, %v2302_v44  ;;  %v3886_v47 = vpop.f32.mrb[42].mxu0  ;;  %v1222_v22 = vpop.f32.mrb[43].mxu1 }
 0x14a   : > { %v2317_v50 = vadd.f32 %v3886_v47, %v3678_v5  ;;  %v2311_v51 = vpop.f32.mrb[43].mxu0 }
 0x14b   : > { %v2312_v55 = vadd.f32 %v2311_v51, %v1222_v22 }
 0x14c   : > { %v5119_v8 = vmax.f32 %v2817_v13, %v2317_v50  ;;  %v3681_v18 = vpop.f32.mrb[44].mxu1 }
 0x14d   : > { %v5124_v29 = vmax.f32 %v2810_v16, %v2312_v55  ;;  %v3889_v59 = vpop.f32.mrb[44].mxu0  ;;  %v1232_v32 = vpop.f32.mrb[45].mxu1 }
 0x14e   : > { %v2327_v62 = vadd.f32 %v3889_v59, %v3681_v18  ;;  %v2321_v0 = vpop.f32.mrb[45].mxu0 }
 0x14f   : > { %v2322_v4 = vadd.f32 %v2321_v0, %v1232_v32 }
 0x150   : > { %v5129_v20 = vmax.f32 %v2831_v27, %v2327_v62  ;;  %v3684_v24 = vpop.f32.mrb[46].mxu1 }
 0x151   : > { %v5134_v39 = vmax.f32 %v2824_v33, %v2322_v4  ;;  %v3892_v7 = vpop.f32.mrb[46].mxu0  ;;  %v1242_v42 = vpop.f32.mrb[47].mxu1 }
 0x152   : > { %v2337_v11 = vadd.f32 %v3892_v7, %v3684_v24  ;;  %v2331_v13 = vpop.f32.mrb[47].mxu0 }
 0x153   : > { %v2332_v16 = vadd.f32 %v2331_v13, %v1242_v42 }
 0x154   : > { %v5139_v30 = vmax.f32 %v2845_v46, %v2337_v11  ;;  %v3687_v35 = vpop.f32.mrb[48].mxu1 }
 0x155   : > { %v5144_v49 = vmax.f32 %v2838_v54, %v2332_v16  ;;  %v3895_v23 = vpop.f32.mrb[48].mxu0  ;;  %v1252_v52 = vpop.f32.mrb[49].mxu1 }
 0x156   : > { %v5146_v26 = vadd.f32 %v3895_v23, %v3687_v35  ;;  %v2341_v27 = vpop.f32.mrb[49].mxu0 }
 0x157   : > { %v5148_v33 = vadd.f32 %v2341_v27, %v1252_v52 }
 0x158   : > { %v2749_v43 = vmax.f32 %v5069_v6, %v5146_v26  ;;  %v3690_v10 = vpop.f32.mrb[50].mxu1 }
 0x159   : > { %v2742_v61 = vmax.f32 %v5074_v15, %v5148_v33  ;;  %v3898_v38 = vpop.f32.mrb[50].mxu0  ;;  %v1262_v46 = vpop.f32.mrb[51].mxu1 }
 0x15a   : > { %v5154_v56 = vadd.f32 %v3898_v38, %v3690_v10  ;;  %v2351_v1 = vpop.f32.mrb[51].mxu0 }
 0x15b   : > { %v5156_v45 = vadd.f32 %v2351_v1, %v1262_v46 }
 0x15c   : > { %v2763_v54 = vmax.f32 %v5079_v36, %v5154_v56  ;;  %v3693_v14 = vpop.f32.mrb[52].mxu1 }
 0x15d   : > { %v2756_v17 = vmax.f32 %v5084_v53, %v5156_v45  ;;  %v3901_v21 = vpop.f32.mrb[52].mxu0  ;;  %v1272_v57 = vpop.f32.mrb[53].mxu1 }
 0x15e   : > { %v5162_v25 = vadd.f32 %v3901_v21, %v3693_v14  ;;  %v2361_v2 = vpop.f32.mrb[53].mxu0 }
 0x15f   : > { %v5164_v28 = vadd.f32 %v2361_v2, %v1272_v57 }
 0x160   : > { %v2777_v31 = vmax.f32 %v5089_v48, %v5162_v25  ;;  %v3696_v34 = vpop.f32.mrb[54].mxu1 }
 0x161   : > { %v2770_v60 = vmax.f32 %v5094_v63, %v5164_v28  ;;  %v3904_v37 = vpop.f32.mrb[54].mxu0  ;;  %v1282_v12 = vpop.f32.mrb[55].mxu1 }
 0x162   : > { %v5170_v40 = vadd.f32 %v3904_v37, %v3696_v34  ;;  %v2371_v41 = vpop.f32.mrb[55].mxu0 }
 0x163   : > { %v5172_v44 = vadd.f32 %v2371_v41, %v1282_v12 }
 0x164   : > { %v2791_v5 = vmax.f32 %v5099_v58, %v5170_v40  ;;  %v3699_v47 = vpop.f32.mrb[56].mxu1 }
 0x165   : > { %v2784_v22 = vmax.f32 %v5104_v9, %v5172_v44  ;;  %v3907_v50 = vpop.f32.mrb[56].mxu0  ;;  %v1292_v51 = vpop.f32.mrb[57].mxu1 }
 0x166   : > { %v5178_v55 = vadd.f32 %v3907_v50, %v3699_v47  ;;  %v2381_v18 = vpop.f32.mrb[57].mxu0 }
 0x167   : > { %v5180_v59 = vadd.f32 %v2381_v18, %v1292_v51 }
 0x168   : > { %v2805_v32 = vmax.f32 %v5109_v3, %v5178_v55  ;;  %v3702_v62 = vpop.f32.mrb[58].mxu1 }
 0x169   : > { %v2798_v0 = vmax.f32 %v5114_v19, %v5180_v59  ;;  %v3910_v4 = vpop.f32.mrb[58].mxu0  ;;  %v1302_v24 = vpop.f32.mrb[59].mxu1 }
 0x16a   : > { %v5186_v7 = vadd.f32 %v3910_v4, %v3702_v62  ;;  %v2391_v42 = vpop.f32.mrb[59].mxu0 }
 0x16b   : > { %v5188_v11 = vadd.f32 %v2391_v42, %v1302_v24 }
 0x16c   : > { %v2819_v13 = vmax.f32 %v5119_v8, %v5186_v7  ;;  %v3705_v16 = vpop.f32.mrb[60].mxu1 }
 0x16d   : > { %v2812_v35 = vmax.f32 %v5124_v29, %v5188_v11  ;;  %v3913_v23 = vpop.f32.mrb[60].mxu0  ;;  %v1312_v52 = vpop.f32.mrb[61].mxu1 }
 0x16e   : > { %v5194_v27 = vadd.f32 %v3913_v23, %v3705_v16  ;;  %v2401_v10 = vpop.f32.mrb[61].mxu0 }
 0x16f   : > { %v5196_v38 = vadd.f32 %v2401_v10, %v1312_v52 }
 0x170   : > { %v2833_v46 = vmax.f32 %v5129_v20, %v5194_v27  ;;  %v3708_v1 = vpop.f32.mrb[62].mxu1 }
 0x171   : > { %v2826_v14 = vmax.f32 %v5134_v39, %v5196_v38  ;;  %v3916_v21 = vpop.f32.mrb[62].mxu0  ;;  %v1322_v57 = vpop.f32.mrb[63].mxu1 }
 0x172   : > { %v5202_v2 = vadd.f32 %v3916_v21, %v3708_v1  ;;  %v2411_v34 = vpop.f32.mrb[63].mxu0 }
 0x173   : > { %v5204_v37 = vadd.f32 %v2411_v34, %v1322_v57 }
 0x174   : > { %v2847_v12 = vmax.f32 %v5139_v30, %v5202_v2  ;;  %v3711_v41 = vpop.f32.mrb[64].mxu1 }
 0x175   : > { %v2840_v47 = vmax.f32 %v5144_v49, %v5204_v37  ;;  %v3919_v50 = vpop.f32.mrb[64].mxu0  ;;  %v1332_v51 = vpop.f32.mrb[65].mxu1 }
 0x176   : > { %v2427_v18 = vadd.f32 %v3919_v50, %v3711_v41  ;;  %v2421_v62 = vpop.f32.mrb[65].mxu0 }
 0x177   : > { %v2422_v4 = vadd.f32 %v2421_v62, %v1332_v51 }
 0x178   : > { %v5213_v24 = vmax.f32 %v2749_v43, %v2427_v18  ;;  %v3714_v42 = vpop.f32.mrb[66].mxu1 }
 0x179   : > { %v5218_v16 = vmax.f32 %v2742_v61, %v2422_v4  ;;  %v3922_v23 = vpop.f32.mrb[66].mxu0  ;;  %v1342_v52 = vpop.f32.mrb[67].mxu1 }
 0x17a   : > { %v2437_v10 = vadd.f32 %v3922_v23, %v3714_v42  ;;  %v2431_v1 = vpop.f32.mrb[67].mxu0 }
 0x17b   : > { %v2432_v21 = vadd.f32 %v2431_v1, %v1342_v52 }
 0x17c   : > { %v5223_v57 = vmax.f32 %v2763_v54, %v2437_v10  ;;  %v3717_v34 = vpop.f32.mrb[68].mxu1 }
 0x17d   : > { %v5228_v6 = vmax.f32 %v2756_v17, %v2432_v21  ;;  %v3925_v26 = vpop.f32.mrb[68].mxu0  ;;  %v1352_v15 = vpop.f32.mrb[69].mxu1 }
 0x17e   : > { %v2447_v33 = vadd.f32 %v3925_v26, %v3717_v34  ;;  %v2441_v43 = vpop.f32.mrb[69].mxu0 }
 0x17f   : > { %v2442_v61 = vadd.f32 %v2441_v43, %v1352_v15 }
 0x180   : > { %v5233_v41 = vmax.f32 %v2777_v31, %v2447_v33  ;;  %v3720_v50 = vpop.f32.mrb[70].mxu1 }
 0x181   : > { %v5238_v36 = vmax.f32 %v2770_v60, %v2442_v61  ;;  %v3928_v56 = vpop.f32.mrb[70].mxu0  ;;  %v1362_v53 = vpop.f32.mrb[71].mxu1 }
 0x182   : > { %v2457_v45 = vadd.f32 %v3928_v56, %v3720_v50  ;;  %v2451_v54 = vpop.f32.mrb[71].mxu0 }
 0x183   : > { %v2452_v17 = vadd.f32 %v2451_v54, %v1362_v53 }
 0x184   : > { %v5243_v51 = vmax.f32 %v2791_v5, %v2457_v45  ;;  %v3723_v18 = vpop.f32.mrb[72].mxu1 }
 0x185   : > { %v5248_v48 = vmax.f32 %v2784_v22, %v2452_v17  ;;  %v3931_v25 = vpop.f32.mrb[72].mxu0  ;;  %v1372_v63 = vpop.f32.mrb[73].mxu1 }
 0x186   : > { %v2467_v28 = vadd.f32 %v3931_v25, %v3723_v18  ;;  %v2461_v31 = vpop.f32.mrb[73].mxu0 }
 0x187   : > { %v2462_v60 = vadd.f32 %v2461_v31, %v1372_v63 }
 0x188   : > { %v5253_v62 = vmax.f32 %v2805_v32, %v2467_v28  ;;  %v3726_v4 = vpop.f32.mrb[74].mxu1 }
 0x189   : > { %v5258_v58 = vmax.f32 %v2798_v0, %v2462_v60  ;;  %v3934_v40 = vpop.f32.mrb[74].mxu0  ;;  %v1382_v9 = vpop.f32.mrb[75].mxu1 }
 0x18a   : > { %v2477_v44 = vadd.f32 %v3934_v40, %v3726_v4  ;;  %v2471_v5 = vpop.f32.mrb[75].mxu0 }
 0x18b   : > { %v2472_v22 = vadd.f32 %v2471_v5, %v1382_v9 }
 0x18c   : > { %v5263_v42 = vmax.f32 %v2819_v13, %v2477_v44  ;;  %v3729_v23 = vpop.f32.mrb[76].mxu1 }
 0x18d   : > { %v5268_v3 = vmax.f32 %v2812_v35, %v2472_v22  ;;  %v3937_v55 = vpop.f32.mrb[76].mxu0  ;;  %v1392_v19 = vpop.f32.mrb[77].mxu1 }
 0x18e   : > { %v2487_v59 = vadd.f32 %v3937_v55, %v3729_v23  ;;  %v2481_v32 = vpop.f32.mrb[77].mxu0 }
 0x18f   : > { %v2482_v0 = vadd.f32 %v2481_v32, %v1392_v19 }
 0x190   : > { %v5273_v52 = vmax.f32 %v2833_v46, %v2487_v59  ;;  %v3732_v10 = vpop.f32.mrb[78].mxu1 }
 0x191   : > { %v5278_v8 = vmax.f32 %v2826_v14, %v2482_v0  ;;  %v3940_v7 = vpop.f32.mrb[78].mxu0  ;;  %v1402_v29 = vpop.f32.mrb[79].mxu1 }
 0x192   : > { %v2497_v11 = vadd.f32 %v3940_v7, %v3732_v10  ;;  %v2491_v13 = vpop.f32.mrb[79].mxu0 }
 0x193   : > { %v2492_v35 = vadd.f32 %v2491_v13, %v1402_v29 }
 0x194   : > { %v5283_v1 = vmax.f32 %v2847_v12, %v2497_v11  ;;  %v3735_v21 = vpop.f32.mrb[80].mxu1 }
 0x195   : > { %v5288_v20 = vmax.f32 %v2840_v47, %v2492_v35  ;;  %v3943_v27 = vpop.f32.mrb[80].mxu0  ;;  %v1412_v39 = vpop.f32.mrb[81].mxu1 }
 0x196   : > { %v5290_v38 = vadd.f32 %v3943_v27, %v3735_v21  ;;  %v2501_v46 = vpop.f32.mrb[81].mxu0 }
 0x197   : > { %v5292_v14 = vadd.f32 %v2501_v46, %v1412_v39 }
 0x198   : > { %v2751_v34 = vmax.f32 %v5213_v24, %v5290_v38  ;;  %v3738_v26 = vpop.f32.mrb[82].mxu1 }
 0x199   : > { %v2744_v30 = vmax.f32 %v5218_v16, %v5292_v14  ;;  %v3946_v2 = vpop.f32.mrb[82].mxu0  ;;  %v1422_v12 = vpop.f32.mrb[83].mxu1 }
 0x19a   : > { %v5298_v15 = vadd.f32 %v3946_v2, %v3738_v26  ;;  %v2511_v49 = vpop.f32.mrb[83].mxu0 }
 0x19b   : > { %v5300_v37 = vadd.f32 %v2511_v49, %v1422_v12 }
 0x19c   : > { %v2765_v47 = vmax.f32 %v5223_v57, %v5298_v15  ;;  %v3741_v33 = vpop.f32.mrb[84].mxu1 }
 0x19d   : > { %v2758_v43 = vmax.f32 %v5228_v6, %v5300_v37  ;;  %v3949_v61 = vpop.f32.mrb[84].mxu0  ;;  %v1432_v50 = vpop.f32.mrb[85].mxu1 }
 0x19e   : > { %v5306_v56 = vadd.f32 %v3949_v61, %v3741_v33  ;;  %v2521_v53 = vpop.f32.mrb[85].mxu0 }
 0x19f   : > { %v5308_v45 = vadd.f32 %v2521_v53, %v1432_v50 }
 0x1a0   : > { %v2779_v54 = vmax.f32 %v5233_v41, %v5306_v56  ;;  %v3744_v17 = vpop.f32.mrb[86].mxu1 }
 0x1a1   : > { %v2772_v18 = vmax.f32 %v5238_v36, %v5308_v45  ;;  %v3952_v25 = vpop.f32.mrb[86].mxu0  ;;  %v1442_v63 = vpop.f32.mrb[87].mxu1 }
 0x1a2   : > { %v5314_v28 = vadd.f32 %v3952_v25, %v3744_v17  ;;  %v2531_v31 = vpop.f32.mrb[87].mxu0 }
 0x1a3   : > { %v5316_v60 = vadd.f32 %v2531_v31, %v1442_v63 }
 0x1a4   : > { %v2793_v4 = vmax.f32 %v5243_v51, %v5314_v28  ;;  %v3747_v40 = vpop.f32.mrb[88].mxu1 }
 0x1a5   : > { %v2786_v9 = vmax.f32 %v5248_v48, %v5316_v60  ;;  %v3955_v44 = vpop.f32.mrb[88].mxu0  ;;  %v1452_v5 = vpop.f32.mrb[89].mxu1 }
 0x1a6   : > { %v5322_v22 = vadd.f32 %v3955_v44, %v3747_v40  ;;  %v2541_v23 = vpop.f32.mrb[89].mxu0 }
 0x1a7   : > { %v5324_v55 = vadd.f32 %v2541_v23, %v1452_v5 }
 0x1a8   : > { %v2807_v19 = vmax.f32 %v5253_v62, %v5322_v22  ;;  %v3750_v59 = vpop.f32.mrb[90].mxu1 }
 0x1a9   : > { %v2800_v32 = vmax.f32 %v5258_v58, %v5324_v55  ;;  %v3958_v0 = vpop.f32.mrb[90].mxu0  ;;  %v1462_v10 = vpop.f32.mrb[91].mxu1 }
 0x1aa   : > { %v5330_v7 = vadd.f32 %v3958_v0, %v3750_v59  ;;  %v2551_v29 = vpop.f32.mrb[91].mxu0 }
 0x1ab   : > { %v5332_v11 = vadd.f32 %v2551_v29, %v1462_v10 }
 0x1ac   : > { %v2821_v13 = vmax.f32 %v5263_v42, %v5330_v7  ;;  %v3753_v35 = vpop.f32.mrb[92].mxu1 }
 0x1ad   : > { %v2814_v21 = vmax.f32 %v5268_v3, %v5332_v11  ;;  %v3961_v27 = vpop.f32.mrb[92].mxu0  ;;  %v1472_v39 = vpop.f32.mrb[93].mxu1 }
 0x1ae   : > { %v5338_v46 = vadd.f32 %v3961_v27, %v3753_v35  ;;  %v2561_v26 = vpop.f32.mrb[93].mxu0 }
 0x1af   : > { %v5340_v2 = vadd.f32 %v2561_v26, %v1472_v39 }
 0x1b0   : > { %v2835_v12 = vmax.f32 %v5273_v52, %v5338_v46  ;;  %v3756_v49 = vpop.f32.mrb[94].mxu1 }
 0x1b1   : > { %v2828_v33 = vmax.f32 %v5278_v8, %v5340_v2  ;;  %v3964_v61 = vpop.f32.mrb[94].mxu0  ;;  %v1482_v50 = vpop.f32.mrb[95].mxu1 }
 0x1b2   : > { %v5346_v53 = vadd.f32 %v3964_v61, %v3756_v49  ;;  %v2571_v17 = vpop.f32.mrb[95].mxu0 }
 0x1b3   : > { %v5348_v25 = vadd.f32 %v2571_v17, %v1482_v50 }
 0x1b4   : > { %v2849_v63 = vmax.f32 %v5283_v1, %v5346_v53  ;;  %v3759_v31 = vpop.f32.mrb[96].mxu1  ;;  %v5438_v1 = vld [vmem:[%s5553_s4] ss:$0 sm:$0xff] }
 0x1b5   : > { %v2842_v40 = vmax.f32 %v5288_v20, %v5348_v25  ;;  %v3967_v44 = vpop.f32.mrb[96].mxu0  ;;  %v1492_v5 = vpop.f32.mrb[97].mxu1 }
 0x1b6   : > { %v2587_v23 = vadd.f32 %v3967_v44, %v3759_v31  ;;  %v2581_v59 = vpop.f32.mrb[97].mxu0 }
 0x1b7   : > { %v2582_v0 = vadd.f32 %v2581_v59, %v1492_v5 }
 0x1b8   : > { %v5357_v10 = vmax.f32 %v2751_v34, %v2587_v23  ;;  %v3762_v29 = vpop.f32.mrb[98].mxu1 }
 0x1b9   : > { %v5362_v35 = vmax.f32 %v2744_v30, %v2582_v0  ;;  %v3970_v27 = vpop.f32.mrb[98].mxu0  ;;  %v1502_v39 = vpop.f32.mrb[99].mxu1 }
 0x1ba   : > { %v2597_v26 = vadd.f32 %v3970_v27, %v3762_v29  ;;  %v2591_v49 = vpop.f32.mrb[99].mxu0 }
 0x1bb   : > { %v2592_v61 = vadd.f32 %v2591_v49, %v1502_v39 }
 0x1bc   : > { %v5367_v50 = vmax.f32 %v2765_v47, %v2597_v26  ;;  %v3765_v17 = vpop.f32.mrb[100].mxu1 }
 0x1bd   : > { %v5372_v24 = vmax.f32 %v2758_v43, %v2592_v61  ;;  %v3973_v38 = vpop.f32.mrb[100].mxu0  ;;  %v1512_v16 = vpop.f32.mrb[101].mxu1 }
 0x1be   : > { %v2607_v14 = vadd.f32 %v3973_v38, %v3765_v17  ;;  %v2601_v34 = vpop.f32.mrb[101].mxu0 }
 0x1bf   : > { %v2602_v30 = vadd.f32 %v2601_v34, %v1512_v16 }
 0x1c0   : > { %v5377_v31 = vmax.f32 %v2779_v54, %v2607_v14  ;;  %v3768_v44 = vpop.f32.mrb[102].mxu1 }
 0x1c1   : > { %v5382_v57 = vmax.f32 %v2772_v18, %v2602_v30  ;;  %v3976_v15 = vpop.f32.mrb[102].mxu0  ;;  %v1522_v6 = vpop.f32.mrb[103].mxu1 }
 0x1c2   : > { %v2617_v37 = vadd.f32 %v3976_v15, %v3768_v44  ;;  %v2611_v47 = vpop.f32.mrb[103].mxu0 }
 0x1c3   : > { %v2612_v43 = vadd.f32 %v2611_v47, %v1522_v6 }
 0x1c4   : > { %v5387_v5 = vmax.f32 %v2793_v4, %v2617_v37  ;;  %v3771_v23 = vpop.f32.mrb[104].mxu1 }
 0x1c5   : > { %v5392_v41 = vmax.f32 %v2786_v9, %v2612_v43  ;;  %v3979_v56 = vpop.f32.mrb[104].mxu0  ;;  %v1532_v36 = vpop.f32.mrb[105].mxu1 }
 0x1c6   : > { %v2627_v45 = vadd.f32 %v3979_v56, %v3771_v23  ;;  %v2621_v54 = vpop.f32.mrb[105].mxu0 }
 0x1c7   : > { %v2622_v18 = vadd.f32 %v2621_v54, %v1532_v36 }
 0x1c8   : > { %v5397_v59 = vmax.f32 %v2807_v19, %v2627_v45  ;;  %v3774_v0 = vpop.f32.mrb[106].mxu1 }
 0x1c9   : > { %v5402_v51 = vmax.f32 %v2800_v32, %v2622_v18  ;;  %v3982_v28 = vpop.f32.mrb[106].mxu0  ;;  %v1542_v48 = vpop.f32.mrb[107].mxu1 }
 0x1ca   : > { %v2637_v60 = vadd.f32 %v3982_v28, %v3774_v0  ;;  %v2631_v4 = vpop.f32.mrb[107].mxu0 }
 0x1cb   : > { %v2632_v9 = vadd.f32 %v2631_v4, %v1542_v48 }
 0x1cc   : > { %v5407_v29 = vmax.f32 %v2821_v13, %v2637_v60  ;;  %v3777_v27 = vpop.f32.mrb[108].mxu1 }
 0x1cd   : > { %v5412_v62 = vmax.f32 %v2814_v21, %v2632_v9  ;;  %v3985_v22 = vpop.f32.mrb[108].mxu0  ;;  %v1552_v58 = vpop.f32.mrb[109].mxu1 }
 0x1ce   : > { %v2647_v55 = vadd.f32 %v3985_v22, %v3777_v27  ;;  %v2641_v19 = vpop.f32.mrb[109].mxu0 }
 0x1cf   : > { %v2642_v32 = vadd.f32 %v2641_v19, %v1552_v58 }
 0x1d0   : > { %v5417_v39 = vmax.f32 %v2835_v12, %v2647_v55  ;;  %v3780_v26 = vpop.f32.mrb[110].mxu1 }
 0x1d1   : > { %v5422_v42 = vmax.f32 %v2828_v33, %v2642_v32  ;;  %v3988_v7 = vpop.f32.mrb[110].mxu0  ;;  %v1562_v3 = vpop.f32.mrb[111].mxu1 }
 0x1d2   : > { %v2657_v11 = vadd.f32 %v3988_v7, %v3780_v26  ;;  %v2651_v13 = vpop.f32.mrb[111].mxu0 }
 0x1d3   : > { %v2652_v21 = vadd.f32 %v2651_v13, %v1562_v3 }
 0x1d4   : > { %v5427_v49 = vmax.f32 %v2849_v63, %v2657_v11  ;;  %v3783_v61 = vpop.f32.mrb[112].mxu1 }
 0x1d5   : > { %v5432_v52 = vmax.f32 %v2842_v40, %v2652_v21  ;;  %v3991_v46 = vpop.f32.mrb[112].mxu0  ;;  %v1572_v8 = vpop.f32.mrb[113].mxu1 }
 0x1d6   : > { %v2667_v2 = vadd.f32 %v3991_v46, %v3783_v61  ;;  %v2661_v12 = vpop.f32.mrb[113].mxu0 }
 0x1d7   : > { %v2662_v33 = vadd.f32 %v2661_v12, %v1572_v8 }
 0x1d8   : > { %v2753_v17 = vmax.f32 %v5357_v10, %v2667_v2  ;;  %v3786_v38 = vpop.f32.mrb[114].mxu1 }
 0x1d9   : > { %v3994_v53 = vpop.f32.mrb[114].mxu0  ;;  %v1582_v63 = vpop.f32.mrb[115].mxu1  ;;  %v2746_v16 = vmax.f32 %v5362_v35, %v2662_v33 }
 0x1da   : > { %v2677_v20 = vadd.f32 %v3994_v53, %v3786_v38  ;;  %v2671_v25 = vpop.f32.mrb[115].mxu0  ;;  %v2860_v37 = vadd.f32 %v5438_v1, %v2753_v17 }
 0x1db   : > { %v2672_v40 = vadd.f32 %v2671_v25, %v1582_v63  ;;  %v2859_v14 = vadd.f32 %v5438_v1, %v2746_v16 }
 0x1dc   : > { %v2767_v34 = vmax.f32 %v5367_v50, %v2677_v20  ;;  %v3789_v30 = vpop.f32.mrb[116].mxu1  ;;  %v2876_v50 = vmax.f32 %v2860_v37, 0.0 }
 0x1dd   : > { %v2760_v10 = vmax.f32 %v5372_v24, %v2672_v40  ;;  %v3997_v44 = vpop.f32.mrb[116].mxu0  ;;  %v1592_v15 = vpop.f32.mrb[117].mxu1  ;;  %v2875_v6 = vmax.f32 %v2859_v14, 0.0 }
 0x1de   : > { %v2687_v47 = vadd.f32 %v3997_v44, %v3789_v30  ;;  %v2681_v43 = vpop.f32.mrb[117].mxu0  ;;  %v2862_v22 = vadd.f32 %v5438_v1, %v2767_v34 }
 0x1df   : > { %v2682_v23 = vadd.f32 %v2681_v43, %v1592_v15  ;;  %2891 = vxpose.xlu0.b32.start [1/16] %v2875_v6, 128  ;;  %v2861_v18 = vadd.f32 %v5438_v1, %v2760_v10 }
 0x1e0   : > { %v2781_v35 = vmax.f32 %v5377_v31, %v2687_v47  ;;  %v3792_v56 = vpop.f32.mrb[118].mxu1 }
 0x1e1   : > { %v2774_v36 = vmax.f32 %v5382_v57, %v2682_v23  ;;  %v4000_v45 = vpop.f32.mrb[118].mxu0  ;;  %v1602_v54 = vpop.f32.mrb[119].mxu1  ;;  %v2877_v31 = vmax.f32 %v2861_v18, 0.0 }
 0x1e2   : > { %v2697_v24 = vadd.f32 %v4000_v45, %v3792_v56  ;;  %v2691_v0 = vpop.f32.mrb[119].mxu0  ;;  %v2864_v33 = vadd.f32 %v5438_v1, %v2781_v35 }
 0x1e3   : > { %v2692_v28 = vadd.f32 %v2691_v0, %v1602_v54  ;;  %2892 = vxpose.xlu0.b32.cont [2/16] %v2876_v50, 128  ;;  %v2863_v11 = vadd.f32 %v5438_v1, %v2774_v36 }
 0x1e4   : > { %v2795_v48 = vmax.f32 %v5387_v5, %v2697_v24  ;;  %v3795_v60 = vpop.f32.mrb[120].mxu1  ;;  %v2878_v5 = vmax.f32 %v2862_v22, 0.0 }
 0x1e5   : > { %v2788_v4 = vmax.f32 %v5392_v41, %v2692_v28  ;;  %v4003_v9 = vpop.f32.mrb[120].mxu0  ;;  %v1612_v27 = vpop.f32.mrb[121].mxu1 }
 0x1e6   : > { %v2707_v57 = vadd.f32 %v4003_v9, %v3795_v60  ;;  %v2701_v58 = vpop.f32.mrb[121].mxu0  ;;  %v2866_v15 = vadd.f32 %v5438_v1, %v2795_v48 }
 0x1e7   : > { %v2702_v55 = vadd.f32 %v2701_v58, %v1612_v27  ;;  %2893 = vxpose.xlu0.b32.cont [3/16] %v2877_v31, 128  ;;  %v2865_v40 = vadd.f32 %v5438_v1, %v2788_v4 }
 0x1e8   : > { %v2809_v19 = vmax.f32 %v5397_v59, %v2707_v57  ;;  %v3798_v32 = vpop.f32.mrb[122].mxu1  ;;  %v2879_v59 = vmax.f32 %v2863_v11, 0.0 }
 0x1e9   : > { %v2802_v26 = vmax.f32 %v5402_v51, %v2702_v55  ;;  %v4006_v7 = vpop.f32.mrb[122].mxu0  ;;  %v1622_v3 = vpop.f32.mrb[123].mxu1  ;;  %v2881_v44 = vmax.f32 %v2865_v40, 0.0 }
 0x1ea   : > { %v2717_v41 = vadd.f32 %v4006_v7, %v3798_v32  ;;  %v2711_v13 = vpop.f32.mrb[123].mxu0  ;;  %v2868_v37 = vadd.f32 %v5438_v1, %v2809_v19 }
 0x1eb   : > { %v2712_v21 = vadd.f32 %v2711_v13, %v1622_v3  ;;  %2894 = vxpose.xlu0.b32.cont [4/16] %v2878_v5, 128 }
 0x1ec   : > { %v2823_v61 = vmax.f32 %v5407_v29, %v2717_v41  ;;  %v3801_v46 = vpop.f32.mrb[124].mxu1  ;;  %v2880_v29 = vmax.f32 %v2864_v33, 0.0  ;;  %v2884_v47 = vmax.f32 %v2868_v37, 0.0 }
 0x1ed   : > { %v2816_v8 = vmax.f32 %v5412_v62, %v2712_v21  ;;  %v4009_v2 = vpop.f32.mrb[124].mxu0  ;;  %v1632_v12 = vpop.f32.mrb[125].mxu1 }
 0x1ee   : > { %v2727_v51 = vadd.f32 %v4009_v2, %v3801_v46  ;;  %v2721_v17 = vpop.f32.mrb[125].mxu0 }
 0x1ef   : > { %v2722_v38 = vadd.f32 %v2721_v17, %v1632_v12  ;;  %2895 = vxpose.xlu0.b32.cont [5/16] %v2879_v59, 128  ;;  %v2869_v43 = vadd.f32 %v5438_v1, %v2816_v8 }
 0x1f0   : > { %v2837_v53 = vmax.f32 %v5417_v39, %v2727_v51  ;;  %v3804_v63 = vpop.f32.mrb[126].mxu1  ;;  %v2882_v39 = vmax.f32 %v2866_v15, 0.0 }
 0x1f1   : > { %v2830_v16 = vmax.f32 %v5422_v42, %v2722_v38  ;;  %v4012_v20 = vpop.f32.mrb[126].mxu0  ;;  %v1642_v25 = vpop.f32.mrb[127].mxu1  ;;  %v2867_v42 = vadd.f32 %v5438_v1, %v2802_v26  ;;  %v2885_v23 = vmax.f32 %v2869_v43, 0.0 }
 0x1f2   : > { %v2737_v62 = vadd.f32 %v4012_v20, %v3804_v63  ;;  %v2731_v14 = vpop.f32.mrb[127].mxu0  ;;  %v2872_v36 = vadd.f32 %v5438_v1, %v2837_v53 }
 0x1f3   : > { %v2732_v34 = vadd.f32 %v2731_v14, %v1642_v25  ;;  %2896 = vxpose.xlu0.b32.cont [6/16] %v2880_v29, 128  ;;  %v2883_v6 = vmax.f32 %v2867_v42, 0.0  ;;  %v2871_v35 = vadd.f32 %v5438_v1, %v2830_v16 }
 0x1f4   : > { %v2851_v30 = vmax.f32 %v5427_v49, %v2737_v62  ;;  %v2870_v49 = vadd.f32 %v5438_v1, %v2823_v61  ;;  %v2888_v45 = vmax.f32 %v2872_v36, 0.0 }
 0x1f5   : > { %v2844_v10 = vmax.f32 %v5432_v52, %v2732_v34  ;;  %v2887_v56 = vmax.f32 %v2871_v35, 0.0 }
 0x1f6   : > { %v2886_v52 = vmax.f32 %v2870_v49, 0.0  ;;  %v2874_v18 = vadd.f32 %v5438_v1, %v2851_v30 }
 0x1f7   : > { %2897 = vxpose.xlu0.b32.cont [7/16] %v2881_v44, 128  ;;  %v2873_v54 = vadd.f32 %v5438_v1, %v2844_v10 }
 0x1f8   : > { %v2890_v24 = vmax.f32 %v2874_v18, 0.0 }
 0x1f9   : > { %v2889_v50 = vmax.f32 %v2873_v54, 0.0 }
 0x1fb   : > { %2898 = vxpose.xlu0.b32.cont [8/16] %v2882_v39, 128 }
 0x1ff   : > { %2899 = vxpose.xlu0.b32.cont [9/16] %v2883_v6, 128 }
 0x203   : > { %2900 = vxpose.xlu0.b32.cont [10/16] %v2884_v47, 128 }
 0x207   : > { %2901 = vxpose.xlu0.b32.cont [11/16] %v2885_v23, 128 }
 0x20b   : > { %2902 = vxpose.xlu0.b32.cont [12/16] %v2886_v52, 128 }
 0x20f   : > { %2903 = vxpose.xlu0.b32.cont [13/16] %v2887_v56, 128 }
 0x213   : > { %2904 = vxpose.xlu0.b32.cont [14/16] %v2888_v45, 128 }
 0x217   : > { %2905 = vxpose.xlu0.b32.cont [15/16] %v2889_v50, 128 }
 0x21b   : > { %2906 = vxpose.xlu0.b32.end [16/16] %v2890_v24, 128 }
 0x25f   : > { %v2907_v0 = vpop.trf.xlu0 }
 0x260   : > { %2923 = vst [vmem:[%s5474_s29] sm:$0xff] %v2907_v0 }
 0x263   : > { %v2908_v1 = vpop.trf.xlu0 }
 0x264   : > { %2924 = vst [vmem:[%s5474_s29 + $0x8] sm:$0xff] %v2908_v1 }
 0x267   : > { %v2909_v28 = vpop.trf.xlu0 }
 0x268   : > { %2925 = vst [vmem:[%s5474_s29 + $0x10] sm:$0xff] %v2909_v28 }
 0x26b   : > { %v2910_v48 = vpop.trf.xlu0 }
 0x26c   : > { %2926 = vst [vmem:[%s5474_s29 + $0x18] sm:$0xff] %v2910_v48 }
 0x26f   : > { %v2911_v60 = vpop.trf.xlu0 }
 0x270   : > { %2927 = vst [vmem:[%s5474_s29 + $0x20] sm:$0xff] %v2911_v60 }
 0x273   : > { %v2912_v4 = vpop.trf.xlu0 }
 0x274   : > { %2928 = vst [vmem:[%s5474_s29 + $0x28] sm:$0xff] %v2912_v4 }
 0x277   : > { %v2913_v9 = vpop.trf.xlu0 }
 0x278   : > { %2929 = vst [vmem:[%s5474_s29 + $0x30] sm:$0xff] %v2913_v9 }
 0x27b   : > { %v2914_v27 = vpop.trf.xlu0 }
 0x27c   : > { %2930 = vst [vmem:[%s5474_s29 + $0x38] sm:$0xff] %v2914_v27 }
 0x27f   : > { %v2915_v31 = vpop.trf.xlu0 }
 0x280   : > { %2931 = vst [vmem:[%s5474_s29 + $0x40] sm:$0xff] %v2915_v31 }
 0x283   : > { %v2916_v22 = vpop.trf.xlu0 }
 0x284   : > { %2932 = vst [vmem:[%s5474_s29 + $0x48] sm:$0xff] %v2916_v22 }
 0x287   : > { %v2917_v57 = vpop.trf.xlu0 }
 0x288   : > { %2933 = vst [vmem:[%s5474_s29 + $0x50] sm:$0xff] %v2917_v57 }
 0x28b   : > { %v2918_v58 = vpop.trf.xlu0 }
 0x28c   : > { %2934 = vst [vmem:[%s5474_s29 + $0x58] sm:$0xff] %v2918_v58 }
 0x28f   : > { %v2919_v55 = vpop.trf.xlu0 }
 0x290   : > { %2935 = vst [vmem:[%s5474_s29 + $0x60] sm:$0xff] %v2919_v55 }
 0x293   : > { %v2920_v19 = vpop.trf.xlu0 }
 0x294   : > { %2936 = vst [vmem:[%s5474_s29 + $0x68] sm:$0xff] %v2920_v19 }
 0x297   : > { %v2921_v32 = vpop.trf.xlu0 }
 0x298   : > { %2937 = vst [vmem:[%s5474_s29 + $0x70] sm:$0xff] %v2921_v32 }
 0x29b   : > { %v2922_v26 = vpop.trf.xlu0 }
 0x29c   : > { %2938 = vst [vmem:[%s5474_s29 + $0x78] sm:$0xff] %v2922_v26 }
 0x29d   : > { %4243 = shalt.err (!%p4240_p5)
}
 0x29e   : > { %s4244_s16 = scalar_lea.hbm %s5496_s10, 2048  ;;  %s4248_s25 = scalar_lea.hbm %s5554_s5, 4096 }
 0x29f   : > { %p4245_p6 = scmp.ne.s32.totalorder %s5496_s10, %s4244_s16  ;;  %p4249_p10 = scmp.lt.u32.totalorder %s5496_s10, %s5554_s5 }
 0x2a0   : > { %p4250_p11 = scmp.lt.u32.totalorder %s4248_s25, %s4244_s16  ;;  %p4252_p13 = scmp.lt.u32.totalorder %s4244_s16, %s5496_s10 }
 0x2a1   : > { %p4246_p7 = pnand %p4245_p6, %p4383_p4 }
 0x2a2   : > { %p4251_p12 = por %p4250_p11, %p4249_p10 }
 0x2a3   : > { %p4247_p9 = pneg %p4246_p7 }
 0x2a4   : > { %p4253_p0 = por %p4252_p13, %p4251_p12 }
 0x2a6   : > { %p4254_p1 = pnand %p4253_p0, %p4247_p9 }
 0x2a8   : > { %4257 = shalt.err (!%p4254_p1)
}
 0x2a9   : > { %s4311_s7 = smov 128   ;;  %s4312_s9 = smov 8  }
 0x2aa   : > { %4173 = dma.vmem_to_hbm [thread:$0]  (%p4383_p4), %s5498_s8, 2048, %s5496_s10, %s5503_s12, %s4311_s7, %s4311_s7, %s4312_s9  }
 0x2ab PF: > { %p4179_p2 = scmp.ge.s32.totalorder %s4308_s23, 2  ;;  %s2969_s11 = sand.u32 1, %s4288_s18  }
 0x2ac   : > { %s2970_s13 = scalar_lea.sflag [#allocation3], %s2969_s11 }
 0x2ad   : > { %p4176_p3 = pnand %p4179_p2, %p4390_p8 }
 0x2af   : > { %4283 = dma.done.wait (!%p4176_p3), %s2970_s13, 2048  }
 0x2b0   : > { %4285 = vsyncadd (!%p4176_p3), %s2970_s13, 4294965248  ;;  %s18_s23 = sadd.s32 1, %s4308_s23   ;;  %s5557_s18 = smov %s4292_s19 }
 0x2b1   : > { %p15_p5 = scmp.ge.s32.totalorder %s18_s23, 4   ;;  %s5558_s19 = smov %s4296_s20 }
 0x2b2   : > { %s5559_s20 = smov %s4396_s6  ;;  %s5560_s21 = smov %s4304_s22 }
 0x2b3   : > { %s5561_s22 = smov %s5563_s26  ;;  %17 = sbr.rel (!%p15_p5) target bundleno = 4 (0x4), region = 78 }
 0x2ba   :  { %2975 = vsyncpa [#allocation3], 1 }
 0x2bb   :  { %2977 = vsyncpa [#allocation3 + $0x1], 1 }

</bundles_post_ra>
